<compile_context>
chip_gen: v5e
topology: v5e:2x2
jax: 0.10.0
libtpu: 0.0.40
codegen_flags: <defaults>
</compile_context>

<pallas_src>
import jax
import jax.numpy as jnp
from jax import lax
from jax.experimental import pallas as pl
from jax.experimental.pallas import tpu as pltpu

C_IN, C_MID, H, W_SP = 126, 3, 6, 7
HW = H * W_SP                      # 42
KIN = C_IN * HW                    # 5292: flattened per-sample feature size
KP = 42 * 128                      # 5376: KIN rounded up to a lane multiple
CP = 128                           # lane-padded conv-output width (3*42 = 126)
TKI = 256                          # in-kernel K chunk for the conv GEMM
FC1, NOUT = 42, 7
EPS = 1e-5
TM_MAX = 512                       # pass-1 batch-tile rows (cap)
TM2_MAX = 2048                     # pass-2 batch-tile rows (cap)


def _round_up(v, m):
    return (v + m - 1) // m * m


def _cdiv(a, b):
    return (a + b - 1) // b


def pack_out_block_params(w_conv, gamma, beta, w1, b1, w2, b2, *,
                          act_dtype=jnp.bfloat16):
    """One-time parameter packing (hoist out of the per-step jit)."""
    wc = w_conv.reshape(C_MID, C_IN).astype(jnp.float32)              # (3,126)
    eye = jnp.eye(HW, dtype=jnp.float32)
    # B[c*42+p, o*42+q] = wc[o, c] * (p == q): 1x1 conv as one lane-dense GEMM
    # whose output columns are already in torch's (c, h, w) .view order.
    bmat = (wc.T[:, None, :, None] * eye[None, :, None, :]).reshape(KIN, C_MID * HW)
    bmat = jnp.pad(bmat, ((0, KP - KIN), (0, CP - C_MID * HW))).astype(act_dtype)
    w1t = jnp.zeros((CP, CP), jnp.float32).at[:C_MID * HW, :FC1].set(
        w1.astype(jnp.float32).T)
    w2t = (jnp.zeros((CP, 8), jnp.float32)
           .at[:FC1, :NOUT].set(w2.astype(jnp.float32).T)
           .at[CP - 1, :NOUT].set(b2.astype(jnp.float32)))    # fc2 bias row
    b1_lane = (jnp.zeros((CP,), jnp.float32)
               .at[:FC1].set(b1.astype(jnp.float32))
               .at[CP - 1].set(1.0))                          # lane 127 -> 1
    return dict(bmat=bmat, w1t=w1t, w2t=w2t, b1_lane=b1_lane,
                gamma=gamma.astype(jnp.float32), beta=beta.astype(jnp.float32))


def out_block_forward(x, params, *, tile_m=None):
    """Forward pass of OutBlock.  x: (N, 126, 6, 7), f32 or bf16."""
    x = x.reshape(-1, C_IN, H, W_SP)           # keep producer dtype (no cast pass)
    n = x.shape[0]
    xflat = x.reshape(n, KIN)                  # free row-major reshape
    bmat = params["bmat"]

    # Pass-1 tile: large (HBM roofline), but capped so the "parallel" batch
    # axis has >= 2 grid steps so both v7x TensorCores get work.
    if tile_m is None:
        tm = max(8, min(TM_MAX, _round_up(max(1, (n + 1) // 2), 8)))
    else:
        tm = max(8, min(_round_up(int(tile_m), 8), _round_up(n, 8)))
    num_tiles = _cdiv(n, tm)

    # ---- pass 1: conv GEMM (MXU) + per-tile BN partial sums (exact f32) ----
    def conv_stats_kernel(x_ref, b_ref, conv_ref, stats_ref):
        i = pl.program_id(0)
        acc = jnp.zeros((tm, CP), jnp.float32)
        for j in range(KP // TKI):             # aligned 256-wide K chunks
            off = j * TKI
            xs = x_ref[:, off:off + TKI]
            if off + TKI > KIN:                # zero lanes past the true K
                col = lax.broadcasted_iota(jnp.int32, (tm, TKI), 1)
                xs = jnp.where(col < (KIN - off), xs, 0)
            acc = acc + jnp.dot(xs, b_ref[off:off + TKI, :],
                                preferred_element_type=jnp.float32)

        # Mask batch rows past the true N (only relevant in the last tile).
        row = lax.broadcasted_iota(jnp.int32, (tm, 1), 0)
        conv = jnp.where(row < n - i * tm, acc, 0.0)
        conv_ref[...] = conv.astype(conv_ref.dtype)     # bf16 inter-pass store

        # Exact f32 VPU column sums / sums-of-squares (feeds E[x^2]-E[x]^2).
        stats_ref[...] = jnp.zeros_like(stats_ref)
        stats_ref[0:1, :] = jnp.sum(conv, axis=0, keepdims=True)
        stats_ref[1:2, :] = jnp.sum(conv * conv, axis=0, keepdims=True)

    conv_out, stats = pl.pallas_call(
        conv_stats_kernel,
        out_shape=(jax.ShapeDtypeStruct((n, CP), jnp.bfloat16),
                   jax.ShapeDtypeStruct((num_tiles * 8, CP), jnp.float32)),
        grid=(num_tiles,),
        in_specs=[pl.BlockSpec((tm, KP), lambda i: (i, 0)),
                  pl.BlockSpec((KP, CP), lambda i: (0, 0))],
        out_specs=(pl.BlockSpec((tm, CP), lambda i: (i, 0)),
                   pl.BlockSpec((8, CP), lambda i: (i, 0))),
        compiler_params=pltpu.CompilerParams(
            dimension_semantics=("parallel",),
            vmem_limit_bytes=40 * 1024 * 1024),
    )(xflat, bmat)

    # ---- tiny XLA glue: global BN stats -> per-lane scale/shift -------------
    m_count = n * HW
    st = stats.reshape(num_tiles, 8, CP)
    col_sum = jnp.sum(st[:, 0, :C_MID * HW], axis=0)              # (126,)
    col_sumsq = jnp.sum(st[:, 1, :C_MID * HW], axis=0)
    ch_sum = col_sum.reshape(C_MID, HW).sum(axis=1)
    ch_sumsq = col_sumsq.reshape(C_MID, HW).sum(axis=1)
    mean = ch_sum / m_count
    var = jnp.maximum(ch_sumsq / m_count - mean * mean, 0.0)      # biased
    # TODO(synk): BatchNorm running_mean/running_var momentum updates (a
    # training-time buffer side effect) and eval-mode normalization are not
    # modeled; this reproduces nn.BatchNorm2d's training-mode forward.
    scale = params["gamma"] * lax.rsqrt(var + EPS)
    shift = params["beta"] - mean * scale
    scale_lane = jnp.pad(jnp.repeat(scale, HW), (0, CP - C_MID * HW))
    shift_lane = jnp.pad(jnp.repeat(shift, HW), (0, CP - C_MID * HW))
    affine = (jnp.zeros((8, CP), jnp.float32)
              .at[0].set(scale_lane).at[1].set(shift_lane)
              .at[2].set(params["b1_lane"]))

    # ---- pass 2: BN affine + ReLU + fc1 + ReLU + fc2 (fused, big tiles) -----
    tm2 = max(8, min(TM2_MAX, _round_up(max(1, (n + 1) // 2), 8)))
    num_tiles2 = _cdiv(n, tm2)

    def bn_fc_kernel(conv_ref, aff_ref, w1_ref, w2_ref, out_ref):
        c = conv_ref[...].astype(jnp.float32)
        y = jnp.maximum(c * aff_ref[0:1, :] + aff_ref[1:2, :], 0.0)
        h = jnp.dot(y, w1_ref[...], preferred_element_type=jnp.float32)
        h = jnp.maximum(h + aff_ref[2:3, :], 0.0)       # lane 127 stays == 1
        out_ref[...] = jnp.dot(h, w2_ref[...], preferred_element_type=jnp.float32)

    out8 = pl.pallas_call(
        bn_fc_kernel,
        out_shape=jax.ShapeDtypeStruct((n, 8), jnp.float32),
        grid=(num_tiles2,),
        in_specs=[pl.BlockSpec((tm2, CP), lambda i: (i, 0)),
                  pl.BlockSpec((8, CP), lambda i: (0, 0)),
                  pl.BlockSpec((CP, CP), lambda i: (0, 0)),
                  pl.BlockSpec((CP, 8), lambda i: (0, 0))],
        out_specs=pl.BlockSpec((tm2, 8), lambda i: (i, 0)),
        compiler_params=pltpu.CompilerParams(
            dimension_semantics=("parallel",),
            vmem_limit_bytes=16 * 1024 * 1024),
    )(conv_out, affine, params["w1t"], params["w2t"])

    return out8[:, :NOUT]


def reference(x, w_conv, gamma, beta, w1, b1, w2, b2):
    x = x.reshape(-1, C_IN, H, W_SP).astype(jnp.float32)
    n = x.shape[0]
    conv = jnp.einsum('oc,nchw->nohw', w_conv.reshape(C_MID, C_IN), x)
    mean = jnp.mean(conv, axis=(0, 2, 3), keepdims=True)
    var = jnp.mean((conv - mean) ** 2, axis=(0, 2, 3), keepdims=True)
    y = (conv - mean) * lax.rsqrt(var + EPS)
    y = y * gamma.reshape(1, C_MID, 1, 1) + beta.reshape(1, C_MID, 1, 1)
    y = jnp.maximum(y, 0.0).reshape(n, C_MID * HW)
    h = jnp.maximum(y @ w1.T + b1, 0.0)
    return h @ w2.T + b2


if __name__ == "__main__":
    key = jax.random.PRNGKey(0)
    kx, kw, kg, kb, k1w, k1b, k2w, k2b = jax.random.split(key, 8)

    batch = 48
    # Upstream producer emits bf16 activations; the kernel consumes them
    # directly (no f32 cast pass over x).
    x = jax.random.normal(kx, (batch, C_IN, H, W_SP),
                          dtype=jnp.float32).astype(jnp.bfloat16)
    w_conv = 0.1 * jax.random.normal(kw, (C_MID, C_IN, 1, 1), dtype=jnp.float32)
    gamma = 1.0 + 0.1 * jax.random.normal(kg, (C_MID,), dtype=jnp.float32)
    beta = 0.1 * jax.random.normal(kb, (C_MID,), dtype=jnp.float32)
    w1 = 0.1 * jax.random.normal(k1w, (FC1, C_MID * HW), dtype=jnp.float32)
    b1 = 0.1 * jax.random.normal(k1b, (FC1,), dtype=jnp.float32)
    w2 = 0.15 * jax.random.normal(k2w, (NOUT, FC1), dtype=jnp.float32)
    b2 = 0.1 * jax.random.normal(k2b, (NOUT,), dtype=jnp.float32)

    # Built once; not re-materialized every forward call.
    params = pack_out_block_params(w_conv, gamma, beta, w1, b1, w2, b2,
                                   act_dtype=jnp.bfloat16)

    fwd = jax.jit(out_block_forward)
    out = jax.block_until_ready(fwd(x, params))
    ref = jax.block_until_ready(reference(x, w_conv, gamma, beta, w1, b1, w2, b2))

    assert out.shape == (batch, NOUT), out.shape
    max_err = float(jnp.max(jnp.abs(out - ref)))
    # bf16 activations / bf16 inter-pass intermediate vs an f32 reference.
    assert jnp.allclose(out, ref, rtol=3e-2, atol=3e-2), max_err
    print("KERNEL_OK")
</pallas_src>

<mosaic_0001>
module attributes {stable_mosaic.version = 11 : i64} {
  func.func @conv_stats_kernel(%arg0: i32, %arg1: memref<24x5376xbf16, #tpu.memory_space<vmem>>, %arg2: memref<5376x128xbf16, #tpu.memory_space<vmem>>, %arg3: memref<24x128xbf16, #tpu.memory_space<vmem>>, %arg4: memref<8x128xf32, #tpu.memory_space<vmem>>) attributes {dimension_semantics = [#tpu.dimension_semantics<parallel>], iteration_bounds = array<i64: 2>, scalar_prefetch = 0 : i64, scratch_operands = 0 : i64, tpu.core_type = #tpu.core_type<tc>, window_params = [{transform_indices = @transform_0, window_bounds = array<i64: 24, 5376>}, {pipeline_mode = #tpu.pipeline_mode<synchronous>, transform_indices = @transform_1, window_bounds = array<i64: 5376, 128>}, {transform_indices = @transform_2, window_bounds = array<i64: 24, 128>}, {transform_indices = @transform_3, window_bounds = array<i64: 8, 128>}]} {
    %cst = arith.constant 0.000000e+00 : f32
    %0 = vector.broadcast %cst : f32 to vector<24x128xf32>
    %c0 = arith.constant 0 : index
    %c0_0 = arith.constant 0 : index
    %1 = vector.load %arg1[%c0, %c0_0] : memref<24x5376xbf16, #tpu.memory_space<vmem>>, vector<24x256xbf16>
    %c0_1 = arith.constant 0 : index
    %c0_2 = arith.constant 0 : index
    %2 = vector.load %arg2[%c0_1, %c0_2] : memref<5376x128xbf16, #tpu.memory_space<vmem>>, vector<256x128xbf16>
    %cst_3 = arith.constant dense<0.000000e+00> : vector<24x128xf32>
    %3 = tpu.matmul %1, %2, %cst_3 {dimension_numbers = #tpu.dot_dimension_numbers<[1], [0], [0], [1], [0, 0, 1, 1], [], []>} : vector<24x256xbf16>, vector<256x128xbf16>, vector<24x128xf32> -> vector<24x128xf32>
    %4 = arith.addf %0, %3 : vector<24x128xf32>
    %c0_4 = arith.constant 0 : index
    %c256 = arith.constant 256 : index
    %5 = vector.load %arg1[%c0_4, %c256] : memref<24x5376xbf16, #tpu.memory_space<vmem>>, vector<24x256xbf16>
    %c256_5 = arith.constant 256 : index
    %c0_6 = arith.constant 0 : index
    %6 = vector.load %arg2[%c256_5, %c0_6] : memref<5376x128xbf16, #tpu.memory_space<vmem>>, vector<256x128xbf16>
    %cst_7 = arith.constant dense<0.000000e+00> : vector<24x128xf32>
    %7 = tpu.matmul %5, %6, %cst_7 {dimension_numbers = #tpu.dot_dimension_numbers<[1], [0], [0], [1], [0, 0, 1, 1], [], []>} : vector<24x256xbf16>, vector<256x128xbf16>, vector<24x128xf32> -> vector<24x128xf32>
    %8 = arith.addf %4, %7 : vector<24x128xf32>
    %c0_8 = arith.constant 0 : index
    %c512 = arith.constant 512 : index
    %9 = vector.load %arg1[%c0_8, %c512] : memref<24x5376xbf16, #tpu.memory_space<vmem>>, vector<24x256xbf16>
    %c512_9 = arith.constant 512 : index
    %c0_10 = arith.constant 0 : index
    %10 = vector.load %arg2[%c512_9, %c0_10] : memref<5376x128xbf16, #tpu.memory_space<vmem>>, vector<256x128xbf16>
    %cst_11 = arith.constant dense<0.000000e+00> : vector<24x128xf32>
    %11 = tpu.matmul %9, %10, %cst_11 {dimension_numbers = #tpu.dot_dimension_numbers<[1], [0], [0], [1], [0, 0, 1, 1], [], []>} : vector<24x256xbf16>, vector<256x128xbf16>, vector<24x128xf32> -> vector<24x128xf32>
    %12 = arith.addf %8, %11 : vector<24x128xf32>
    %c0_12 = arith.constant 0 : index
    %c768 = arith.constant 768 : index
    %13 = vector.load %arg1[%c0_12, %c768] : memref<24x5376xbf16, #tpu.memory_space<vmem>>, vector<24x256xbf16>
    %c768_13 = arith.constant 768 : index
    %c0_14 = arith.constant 0 : index
    %14 = vector.load %arg2[%c768_13, %c0_14] : memref<5376x128xbf16, #tpu.memory_space<vmem>>, vector<256x128xbf16>
    %cst_15 = arith.constant dense<0.000000e+00> : vector<24x128xf32>
    %15 = tpu.matmul %13, %14, %cst_15 {dimension_numbers = #tpu.dot_dimension_numbers<[1], [0], [0], [1], [0, 0, 1, 1], [], []>} : vector<24x256xbf16>, vector<256x128xbf16>, vector<24x128xf32> -> vector<24x128xf32>
    %16 = arith.addf %12, %15 : vector<24x128xf32>
    %c0_16 = arith.constant 0 : index
    %c1024 = arith.constant 1024 : index
    %17 = vector.load %arg1[%c0_16, %c1024] : memref<24x5376xbf16, #tpu.memory_space<vmem>>, vector<24x256xbf16>
    %c1024_17 = arith.constant 1024 : index
    %c0_18 = arith.constant 0 : index
    %18 = vector.load %arg2[%c1024_17, %c0_18] : memref<5376x128xbf16, #tpu.memory_space<vmem>>, vector<256x128xbf16>
    %cst_19 = arith.constant dense<0.000000e+00> : vector<24x128xf32>
    %19 = tpu.matmul %17, %18, %cst_19 {dimension_numbers = #tpu.dot_dimension_numbers<[1], [0], [0], [1], [0, 0, 1, 1], [], []>} : vector<24x256xbf16>, vector<256x128xbf16>, vector<24x128xf32> -> vector<24x128xf32>
    %20 = arith.addf %16, %19 : vector<24x128xf32>
    %c0_20 = arith.constant 0 : index
    %c1280 = arith.constant 1280 : index
    %21 = vector.load %arg1[%c0_20, %c1280] : memref<24x5376xbf16, #tpu.memory_space<vmem>>, vector<24x256xbf16>
    %c1280_21 = arith.constant 1280 : index
    %c0_22 = arith.constant 0 : index
    %22 = vector.load %arg2[%c1280_21, %c0_22] : memref<5376x128xbf16, #tpu.memory_space<vmem>>, vector<256x128xbf16>
    %cst_23 = arith.constant dense<0.000000e+00> : vector<24x128xf32>
    %23 = tpu.matmul %21, %22, %cst_23 {dimension_numbers = #tpu.dot_dimension_numbers<[1], [0], [0], [1], [0, 0, 1, 1], [], []>} : vector<24x256xbf16>, vector<256x128xbf16>, vector<24x128xf32> -> vector<24x128xf32>
    %24 = arith.addf %20, %23 : vector<24x128xf32>
    %c0_24 = arith.constant 0 : index
    %c1536 = arith.constant 1536 : index
    %25 = vector.load %arg1[%c0_24, %c1536] : memref<24x5376xbf16, #tpu.memory_space<vmem>>, vector<24x256xbf16>
    %c1536_25 = arith.constant 1536 : index
    %c0_26 = arith.constant 0 : index
    %26 = vector.load %arg2[%c1536_25, %c0_26] : memref<5376x128xbf16, #tpu.memory_space<vmem>>, vector<256x128xbf16>
    %cst_27 = arith.constant dense<0.000000e+00> : vector<24x128xf32>
    %27 = tpu.matmul %25, %26, %cst_27 {dimension_numbers = #tpu.dot_dimension_numbers<[1], [0], [0], [1], [0, 0, 1, 1], [], []>} : vector<24x256xbf16>, vector<256x128xbf16>, vector<24x128xf32> -> vector<24x128xf32>
    %28 = arith.addf %24, %27 : vector<24x128xf32>
    %c0_28 = arith.constant 0 : index
    %c1792 = arith.constant 1792 : index
    %29 = vector.load %arg1[%c0_28, %c1792] : memref<24x5376xbf16, #tpu.memory_space<vmem>>, vector<24x256xbf16>
    %c1792_29 = arith.constant 1792 : index
    %c0_30 = arith.constant 0 : index
    %30 = vector.load %arg2[%c1792_29, %c0_30] : memref<5376x128xbf16, #tpu.memory_space<vmem>>, vector<256x128xbf16>
    %cst_31 = arith.constant dense<0.000000e+00> : vector<24x128xf32>
    %31 = tpu.matmul %29, %30, %cst_31 {dimension_numbers = #tpu.dot_dimension_numbers<[1], [0], [0], [1], [0, 0, 1, 1], [], []>} : vector<24x256xbf16>, vector<256x128xbf16>, vector<24x128xf32> -> vector<24x128xf32>
    %32 = arith.addf %28, %31 : vector<24x128xf32>
    %c0_32 = arith.constant 0 : index
    %c2048 = arith.constant 2048 : index
    %33 = vector.load %arg1[%c0_32, %c2048] : memref<24x5376xbf16, #tpu.memory_space<vmem>>, vector<24x256xbf16>
    %c2048_33 = arith.constant 2048 : index
    %c0_34 = arith.constant 0 : index
    %34 = vector.load %arg2[%c2048_33, %c0_34] : memref<5376x128xbf16, #tpu.memory_space<vmem>>, vector<256x128xbf16>
    %cst_35 = arith.constant dense<0.000000e+00> : vector<24x128xf32>
    %35 = tpu.matmul %33, %34, %cst_35 {dimension_numbers = #tpu.dot_dimension_numbers<[1], [0], [0], [1], [0, 0, 1, 1], [], []>} : vector<24x256xbf16>, vector<256x128xbf16>, vector<24x128xf32> -> vector<24x128xf32>
    %36 = arith.addf %32, %35 : vector<24x128xf32>
    %c0_36 = arith.constant 0 : index
    %c2304 = arith.constant 2304 : index
    %37 = vector.load %arg1[%c0_36, %c2304] : memref<24x5376xbf16, #tpu.memory_space<vmem>>, vector<24x256xbf16>
    %c2304_37 = arith.constant 2304 : index
    %c0_38 = arith.constant 0 : index
    %38 = vector.load %arg2[%c2304_37, %c0_38] : memref<5376x128xbf16, #tpu.memory_space<vmem>>, vector<256x128xbf16>
    %cst_39 = arith.constant dense<0.000000e+00> : vector<24x128xf32>
    %39 = tpu.matmul %37, %38, %cst_39 {dimension_numbers = #tpu.dot_dimension_numbers<[1], [0], [0], [1], [0, 0, 1, 1], [], []>} : vector<24x256xbf16>, vector<256x128xbf16>, vector<24x128xf32> -> vector<24x128xf32>
    %40 = arith.addf %36, %39 : vector<24x128xf32>
    %c0_40 = arith.constant 0 : index
    %c2560 = arith.constant 2560 : index
    %41 = vector.load %arg1[%c0_40, %c2560] : memref<24x5376xbf16, #tpu.memory_space<vmem>>, vector<24x256xbf16>
    %c2560_41 = arith.constant 2560 : index
    %c0_42 = arith.constant 0 : index
    %42 = vector.load %arg2[%c2560_41, %c0_42] : memref<5376x128xbf16, #tpu.memory_space<vmem>>, vector<256x128xbf16>
    %cst_43 = arith.constant dense<0.000000e+00> : vector<24x128xf32>
    %43 = tpu.matmul %41, %42, %cst_43 {dimension_numbers = #tpu.dot_dimension_numbers<[1], [0], [0], [1], [0, 0, 1, 1], [], []>} : vector<24x256xbf16>, vector<256x128xbf16>, vector<24x128xf32> -> vector<24x128xf32>
    %44 = arith.addf %40, %43 : vector<24x128xf32>
    %c0_44 = arith.constant 0 : index
    %c2816 = arith.constant 2816 : index
    %45 = vector.load %arg1[%c0_44, %c2816] : memref<24x5376xbf16, #tpu.memory_space<vmem>>, vector<24x256xbf16>
    %c2816_45 = arith.constant 2816 : index
    %c0_46 = arith.constant 0 : index
    %46 = vector.load %arg2[%c2816_45, %c0_46] : memref<5376x128xbf16, #tpu.memory_space<vmem>>, vector<256x128xbf16>
    %cst_47 = arith.constant dense<0.000000e+00> : vector<24x128xf32>
    %47 = tpu.matmul %45, %46, %cst_47 {dimension_numbers = #tpu.dot_dimension_numbers<[1], [0], [0], [1], [0, 0, 1, 1], [], []>} : vector<24x256xbf16>, vector<256x128xbf16>, vector<24x128xf32> -> vector<24x128xf32>
    %48 = arith.addf %44, %47 : vector<24x128xf32>
    %c0_48 = arith.constant 0 : index
    %c3072 = arith.constant 3072 : index
    %49 = vector.load %arg1[%c0_48, %c3072] : memref<24x5376xbf16, #tpu.memory_space<vmem>>, vector<24x256xbf16>
    %c3072_49 = arith.constant 3072 : index
    %c0_50 = arith.constant 0 : index
    %50 = vector.load %arg2[%c3072_49, %c0_50] : memref<5376x128xbf16, #tpu.memory_space<vmem>>, vector<256x128xbf16>
    %cst_51 = arith.constant dense<0.000000e+00> : vector<24x128xf32>
    %51 = tpu.matmul %49, %50, %cst_51 {dimension_numbers = #tpu.dot_dimension_numbers<[1], [0], [0], [1], [0, 0, 1, 1], [], []>} : vector<24x256xbf16>, vector<256x128xbf16>, vector<24x128xf32> -> vector<24x128xf32>
    %52 = arith.addf %48, %51 : vector<24x128xf32>
    %c0_52 = arith.constant 0 : index
    %c3328 = arith.constant 3328 : index
    %53 = vector.load %arg1[%c0_52, %c3328] : memref<24x5376xbf16, #tpu.memory_space<vmem>>, vector<24x256xbf16>
    %c3328_53 = arith.constant 3328 : index
    %c0_54 = arith.constant 0 : index
    %54 = vector.load %arg2[%c3328_53, %c0_54] : memref<5376x128xbf16, #tpu.memory_space<vmem>>, vector<256x128xbf16>
    %cst_55 = arith.constant dense<0.000000e+00> : vector<24x128xf32>
    %55 = tpu.matmul %53, %54, %cst_55 {dimension_numbers = #tpu.dot_dimension_numbers<[1], [0], [0], [1], [0, 0, 1, 1], [], []>} : vector<24x256xbf16>, vector<256x128xbf16>, vector<24x128xf32> -> vector<24x128xf32>
    %56 = arith.addf %52, %55 : vector<24x128xf32>
    %c0_56 = arith.constant 0 : index
    %c3584 = arith.constant 3584 : index
    %57 = vector.load %arg1[%c0_56, %c3584] : memref<24x5376xbf16, #tpu.memory_space<vmem>>, vector<24x256xbf16>
    %c3584_57 = arith.constant 3584 : index
    %c0_58 = arith.constant 0 : index
    %58 = vector.load %arg2[%c3584_57, %c0_58] : memref<5376x128xbf16, #tpu.memory_space<vmem>>, vector<256x128xbf16>
    %cst_59 = arith.constant dense<0.000000e+00> : vector<24x128xf32>
    %59 = tpu.matmul %57, %58, %cst_59 {dimension_numbers = #tpu.dot_dimension_numbers<[1], [0], [0], [1], [0, 0, 1, 1], [], []>} : vector<24x256xbf16>, vector<256x128xbf16>, vector<24x128xf32> -> vector<24x128xf32>
    %60 = arith.addf %56, %59 : vector<24x128xf32>
    %c0_60 = arith.constant 0 : index
    %c3840 = arith.constant 3840 : index
    %61 = vector.load %arg1[%c0_60, %c3840] : memref<24x5376xbf16, #tpu.memory_space<vmem>>, vector<24x256xbf16>
    %c3840_61 = arith.constant 3840 : index
    %c0_62 = arith.constant 0 : index
    %62 = vector.load %arg2[%c3840_61, %c0_62] : memref<5376x128xbf16, #tpu.memory_space<vmem>>, vector<256x128xbf16>
    %cst_63 = arith.constant dense<0.000000e+00> : vector<24x128xf32>
    %63 = tpu.matmul %61, %62, %cst_63 {dimension_numbers = #tpu.dot_dimension_numbers<[1], [0], [0], [1], [0, 0, 1, 1], [], []>} : vector<24x256xbf16>, vector<256x128xbf16>, vector<24x128xf32> -> vector<24x128xf32>
    %64 = arith.addf %60, %63 : vector<24x128xf32>
    %c0_64 = arith.constant 0 : index
    %c4096 = arith.constant 4096 : index
    %65 = vector.load %arg1[%c0_64, %c4096] : memref<24x5376xbf16, #tpu.memory_space<vmem>>, vector<24x256xbf16>
    %c4096_65 = arith.constant 4096 : index
    %c0_66 = arith.constant 0 : index
    %66 = vector.load %arg2[%c4096_65, %c0_66] : memref<5376x128xbf16, #tpu.memory_space<vmem>>, vector<256x128xbf16>
    %cst_67 = arith.constant dense<0.000000e+00> : vector<24x128xf32>
    %67 = tpu.matmul %65, %66, %cst_67 {dimension_numbers = #tpu.dot_dimension_numbers<[1], [0], [0], [1], [0, 0, 1, 1], [], []>} : vector<24x256xbf16>, vector<256x128xbf16>, vector<24x128xf32> -> vector<24x128xf32>
    %68 = arith.addf %64, %67 : vector<24x128xf32>
    %c0_68 = arith.constant 0 : index
    %c4352 = arith.constant 4352 : index
    %69 = vector.load %arg1[%c0_68, %c4352] : memref<24x5376xbf16, #tpu.memory_space<vmem>>, vector<24x256xbf16>
    %c4352_69 = arith.constant 4352 : index
    %c0_70 = arith.constant 0 : index
    %70 = vector.load %arg2[%c4352_69, %c0_70] : memref<5376x128xbf16, #tpu.memory_space<vmem>>, vector<256x128xbf16>
    %cst_71 = arith.constant dense<0.000000e+00> : vector<24x128xf32>
    %71 = tpu.matmul %69, %70, %cst_71 {dimension_numbers = #tpu.dot_dimension_numbers<[1], [0], [0], [1], [0, 0, 1, 1], [], []>} : vector<24x256xbf16>, vector<256x128xbf16>, vector<24x128xf32> -> vector<24x128xf32>
    %72 = arith.addf %68, %71 : vector<24x128xf32>
    %c0_72 = arith.constant 0 : index
    %c4608 = arith.constant 4608 : index
    %73 = vector.load %arg1[%c0_72, %c4608] : memref<24x5376xbf16, #tpu.memory_space<vmem>>, vector<24x256xbf16>
    %c4608_73 = arith.constant 4608 : index
    %c0_74 = arith.constant 0 : index
    %74 = vector.load %arg2[%c4608_73, %c0_74] : memref<5376x128xbf16, #tpu.memory_space<vmem>>, vector<256x128xbf16>
    %cst_75 = arith.constant dense<0.000000e+00> : vector<24x128xf32>
    %75 = tpu.matmul %73, %74, %cst_75 {dimension_numbers = #tpu.dot_dimension_numbers<[1], [0], [0], [1], [0, 0, 1, 1], [], []>} : vector<24x256xbf16>, vector<256x128xbf16>, vector<24x128xf32> -> vector<24x128xf32>
    %76 = arith.addf %72, %75 : vector<24x128xf32>
    %c0_76 = arith.constant 0 : index
    %c4864 = arith.constant 4864 : index
    %77 = vector.load %arg1[%c0_76, %c4864] : memref<24x5376xbf16, #tpu.memory_space<vmem>>, vector<24x256xbf16>
    %c4864_77 = arith.constant 4864 : index
    %c0_78 = arith.constant 0 : index
    %78 = vector.load %arg2[%c4864_77, %c0_78] : memref<5376x128xbf16, #tpu.memory_space<vmem>>, vector<256x128xbf16>
    %cst_79 = arith.constant dense<0.000000e+00> : vector<24x128xf32>
    %79 = tpu.matmul %77, %78, %cst_79 {dimension_numbers = #tpu.dot_dimension_numbers<[1], [0], [0], [1], [0, 0, 1, 1], [], []>} : vector<24x256xbf16>, vector<256x128xbf16>, vector<24x128xf32> -> vector<24x128xf32>
    %80 = arith.addf %76, %79 : vector<24x128xf32>
    %c0_80 = arith.constant 0 : index
    %c5120 = arith.constant 5120 : index
    %81 = vector.load %arg1[%c0_80, %c5120] : memref<24x5376xbf16, #tpu.memory_space<vmem>>, vector<24x256xbf16>
    %82 = tpu.iota {dimensions = array<i32: 1>} : vector<24x256xi32>
    %c172_i32 = arith.constant 172 : i32
    %83 = vector.broadcast %c172_i32 : i32 to vector<24x256xi32>
    %84 = arith.cmpi slt, %82, %83 : vector<24x256xi32>
    %c0_i32 = arith.constant 0 : i32
    %85 = arith.sitofp %c0_i32 : i32 to bf16
    %86 = vector.broadcast %85 : bf16 to vector<24x256xbf16>
    %87 = arith.select %84, %81, %86 : vector<24x256xi1>, vector<24x256xbf16>
    %c5120_81 = arith.constant 5120 : index
    %c0_82 = arith.constant 0 : index
    %88 = vector.load %arg2[%c5120_81, %c0_82] : memref<5376x128xbf16, #tpu.memory_space<vmem>>, vector<256x128xbf16>
    %cst_83 = arith.constant dense<0.000000e+00> : vector<24x128xf32>
    %89 = tpu.matmul %87, %88, %cst_83 {dimension_numbers = #tpu.dot_dimension_numbers<[1], [0], [0], [1], [0, 0, 1, 1], [], []>} : vector<24x256xbf16>, vector<256x128xbf16>, vector<24x128xf32> -> vector<24x128xf32>
    %90 = arith.addf %80, %89 : vector<24x128xf32>
    %91 = tpu.iota {dimensions = array<i32: 0>} : vector<24x1xi32>
    %c24_i32 = arith.constant 24 : i32
    %92 = arith.muli %arg0, %c24_i32 : i32
    %c48_i32 = arith.constant 48 : i32
    %93 = arith.subi %c48_i32, %92 : i32
    %94 = vector.broadcast %93 : i32 to vector<24x1xi32>
    %95 = arith.cmpi slt, %91, %94 : vector<24x1xi32>
    %cst_84 = arith.constant 0.000000e+00 : f32
    %96 = vector.shape_cast %95 : vector<24x1xi1> to vector<24x1xi1>
    %97 = vector.broadcast %96 : vector<24x1xi1> to vector<24x128xi1>
    %98 = vector.broadcast %cst_84 : f32 to vector<24x128xf32>
    %99 = arith.select %97, %90, %98 : vector<24x128xi1>, vector<24x128xf32>
    %100 = arith.truncf %99 : vector<24x128xf32> to vector<24x128xbf16>
    %c0_85 = arith.constant 0 : index
    %c0_86 = arith.constant 0 : index
    %101 = vector.load %arg3[%c0_85, %c0_86] : memref<24x128xbf16, #tpu.memory_space<vmem>>, vector<24x128xbf16>
    tpu.vector_store %arg3[%c0_85, %c0_86], %100 {strides = array<i32>} : memref<24x128xbf16, #tpu.memory_space<vmem>>, vector<24x128xbf16>,
    %cst_87 = arith.constant 0.000000e+00 : f32
    %102 = vector.broadcast %cst_87 : f32 to vector<8x128xf32>
    %c0_88 = arith.constant 0 : index
    %c0_89 = arith.constant 0 : index
    %103 = vector.load %arg4[%c0_88, %c0_89] : memref<8x128xf32, #tpu.memory_space<vmem>>, vector<8x128xf32>
    tpu.vector_store %arg4[%c0_88, %c0_89], %102 {strides = array<i32>} : memref<8x128xf32, #tpu.memory_space<vmem>>, vector<8x128xf32>,
    %cst_90 = arith.constant dense<0.000000e+00> : vector<128xf32>
    %104 = vector.multi_reduction <add>, %99, %cst_90 [0] : vector<24x128xf32> to vector<128xf32>
    %105 = vector.shape_cast %104 : vector<128xf32> to vector<1x128xf32>
    %c0_91 = arith.constant 0 : index
    %c0_92 = arith.constant 0 : index
    %106 = vector.load %arg4[%c0_91, %c0_92] : memref<8x128xf32, #tpu.memory_space<vmem>>, vector<1x128xf32>
    tpu.vector_store %arg4[%c0_91, %c0_92], %105 {strides = array<i32>} : memref<8x128xf32, #tpu.memory_space<vmem>>, vector<1x128xf32>,
    %107 = arith.mulf %99, %99 : vector<24x128xf32>
    %cst_93 = arith.constant dense<0.000000e+00> : vector<128xf32>
    %108 = vector.multi_reduction <add>, %107, %cst_93 [0] : vector<24x128xf32> to vector<128xf32>
    %109 = vector.shape_cast %108 : vector<128xf32> to vector<1x128xf32>
    %c1 = arith.constant 1 : index
    %c0_94 = arith.constant 0 : index
    %110 = vector.load %arg4[%c1, %c0_94] : memref<8x128xf32, #tpu.memory_space<vmem>>, vector<1x128xf32>
    tpu.vector_store %arg4[%c1, %c0_94], %109 {strides = array<i32>} : memref<8x128xf32, #tpu.memory_space<vmem>>, vector<1x128xf32>,
    return
  }
  func.func @transform_0(%arg0: i32) -> (i32, i32) {
    %c0_i32 = arith.constant 0 : i32
    %c0_i32_0 = arith.constant 0 : i32
    return %arg0, %c0_i32 : i32, i32
  }
  func.func @transform_1(%arg0: i32) -> (i32, i32) {
    %c0_i32 = arith.constant 0 : i32
    %c0_i32_0 = arith.constant 0 : i32
    %c0_i32_1 = arith.constant 0 : i32
    return %c0_i32, %c0_i32_0 : i32, i32
  }
  func.func @transform_2(%arg0: i32) -> (i32, i32) {
    %c0_i32 = arith.constant 0 : i32
    %c0_i32_0 = arith.constant 0 : i32
    return %arg0, %c0_i32 : i32, i32
  }
  func.func @transform_3(%arg0: i32) -> (i32, i32) {
    %c0_i32 = arith.constant 0 : i32
    %c0_i32_0 = arith.constant 0 : i32
    return %arg0, %c0_i32 : i32, i32
  }
}

module attributes {stable_mosaic.version = 11 : i64} {
  func.func @bn_fc_kernel(%arg0: i32, %arg1: memref<24x128xbf16, #tpu.memory_space<vmem>>, %arg2: memref<8x128xf32, #tpu.memory_space<vmem>>, %arg3: memref<128x128xf32, #tpu.memory_space<vmem>>, %arg4: memref<128x8xf32, #tpu.memory_space<vmem>>, %arg5: memref<24x8xf32, #tpu.memory_space<vmem>>) attributes {dimension_semantics = [#tpu.dimension_semantics<parallel>], iteration_bounds = array<i64: 2>, scalar_prefetch = 0 : i64, scratch_operands = 0 : i64, tpu.core_type = #tpu.core_type<tc>, window_params = [{transform_indices = @transform_0, window_bounds = array<i64: 24, 128>}, {pipeline_mode = #tpu.pipeline_mode<synchronous>, transform_indices = @transform_1, window_bounds = array<i64: 8, 128>}, {pipeline_mode = #tpu.pipeline_mode<synchronous>, transform_indices = @transform_2, window_bounds = array<i64: 128, 128>}, {pipeline_mode = #tpu.pipeline_mode<synchronous>, transform_indices = @transform_3, window_bounds = array<i64: 128, 8>}, {transform_indices = @transform_4, window_bounds = array<i64: 24, 8>}]} {
    %c0 = arith.constant 0 : index
    %c0_0 = arith.constant 0 : index
    %0 = vector.load %arg1[%c0, %c0_0] : memref<24x128xbf16, #tpu.memory_space<vmem>>, vector<24x128xbf16>
    %1 = arith.extf %0 : vector<24x128xbf16> to vector<24x128xf32>
    %c0_1 = arith.constant 0 : index
    %c0_2 = arith.constant 0 : index
    %2 = vector.load %arg2[%c0_1, %c0_2] : memref<8x128xf32, #tpu.memory_space<vmem>>, vector<1x128xf32>
    %3 = vector.broadcast %2 : vector<1x128xf32> to vector<24x128xf32>
    %4 = arith.mulf %1, %3 : vector<24x128xf32>
    %c1 = arith.constant 1 : index
    %c0_3 = arith.constant 0 : index
    %5 = vector.load %arg2[%c1, %c0_3] : memref<8x128xf32, #tpu.memory_space<vmem>>, vector<1x128xf32>
    %6 = vector.broadcast %5 : vector<1x128xf32> to vector<24x128xf32>
    %7 = arith.addf %4, %6 : vector<24x128xf32>
    %cst = arith.constant 0.000000e+00 : f32
    %8 = vector.broadcast %cst : f32 to vector<24x128xf32>
    %9 = arith.maximumf %7, %8 : vector<24x128xf32>
    %c0_4 = arith.constant 0 : index
    %c0_5 = arith.constant 0 : index
    %10 = vector.load %arg3[%c0_4, %c0_5] : memref<128x128xf32, #tpu.memory_space<vmem>>, vector<128x128xf32>
    %cst_6 = arith.constant dense<0.000000e+00> : vector<24x128xf32>
    %11 = tpu.matmul %9, %10, %cst_6 {dimension_numbers = #tpu.dot_dimension_numbers<[1], [0], [0], [1], [0, 0, 1, 1], [], []>} : vector<24x128xf32>, vector<128x128xf32>, vector<24x128xf32> -> vector<24x128xf32>
    %c2 = arith.constant 2 : index
    %c0_7 = arith.constant 0 : index
    %12 = vector.load %arg2[%c2, %c0_7] : memref<8x128xf32, #tpu.memory_space<vmem>>, vector<1x128xf32>
    %13 = vector.broadcast %12 : vector<1x128xf32> to vector<24x128xf32>
    %14 = arith.addf %11, %13 : vector<24x128xf32>
    %cst_8 = arith.constant 0.000000e+00 : f32
    %15 = vector.broadcast %cst_8 : f32 to vector<24x128xf32>
    %16 = arith.maximumf %14, %15 : vector<24x128xf32>
    %c0_9 = arith.constant 0 : index
    %c0_10 = arith.constant 0 : index
    %17 = vector.load %arg4[%c0_9, %c0_10] : memref<128x8xf32, #tpu.memory_space<vmem>>, vector<128x8xf32>
    %cst_11 = arith.constant dense<0.000000e+00> : vector<24x8xf32>
    %18 = tpu.matmul %16, %17, %cst_11 {dimension_numbers = #tpu.dot_dimension_numbers<[1], [0], [0], [1], [0, 0, 1, 1], [], []>} : vector<24x128xf32>, vector<128x8xf32>, vector<24x8xf32> -> vector<24x8xf32>
    %c0_12 = arith.constant 0 : index
    %c0_13 = arith.constant 0 : index
    %19 = vector.load %arg5[%c0_12, %c0_13] : memref<24x8xf32, #tpu.memory_space<vmem>>, vector<24x8xf32>
    tpu.vector_store %arg5[%c0_12, %c0_13], %18 {strides = array<i32>} : memref<24x8xf32, #tpu.memory_space<vmem>>, vector<24x8xf32>,
    return
  }
  func.func @transform_0(%arg0: i32) -> (i32, i32) {
    %c0_i32 = arith.constant 0 : i32
    %c0_i32_0 = arith.constant 0 : i32
    return %arg0, %c0_i32 : i32, i32
  }
  func.func @transform_1(%arg0: i32) -> (i32, i32) {
    %c0_i32 = arith.constant 0 : i32
    %c0_i32_0 = arith.constant 0 : i32
    %c0_i32_1 = arith.constant 0 : i32
    return %c0_i32, %c0_i32_0 : i32, i32
  }
  func.func @transform_2(%arg0: i32) -> (i32, i32) {
    %c0_i32 = arith.constant 0 : i32
    %c0_i32_0 = arith.constant 0 : i32
    %c0_i32_1 = arith.constant 0 : i32
    return %c0_i32, %c0_i32_0 : i32, i32
  }
  func.func @transform_3(%arg0: i32) -> (i32, i32) {
    %c0_i32 = arith.constant 0 : i32
    %c0_i32_0 = arith.constant 0 : i32
    %c0_i32_1 = arith.constant 0 : i32
    return %c0_i32, %c0_i32_0 : i32, i32
  }
  func.func @transform_4(%arg0: i32) -> (i32, i32) {
    %c0_i32 = arith.constant 0 : i32
    %c0_i32_0 = arith.constant 0 : i32
    return %arg0, %c0_i32 : i32, i32
  }
}

</mosaic_0001>

<bundles_post_ra>
// kernel: out_block_forward.3
= control target key start
LH: loop header
LB: loop body
LE: loop exit
PB: predicated region body
PF: predicated region fallthrough
CT: control target
= control target key end

     0   :  { %s458_s15 = smov 0   ;;  %s588_s0 = inlined_call_operand.vmem [shape: bf16[48,128], index: 0, kind: input, shape index: {}]   ;;  %s589_s1 = inlined_call_operand.vmem [shape: f32[8,128], index: 1, kind: input, shape index: {}]   ;;  %s590_s2 = inlined_call_operand.vmem [shape: f32[128,128], index: 2, kind: input, shape index: {}]   ;;  %s591_s3 = inlined_call_operand.vmem [shape: f32[128,8], index: 3, kind: input, shape index: {}]   ;;  %s592_s4 = inlined_call_operand.vmem [shape: f32[48,8], index: 4, kind: output, shape index: {}]  }
   0x1 LB: > { %s369_s16 = sadd.s32 4294967295, %s431_s15   ;;  %p373_p0 = scmp.ge.s32.totalorder %s431_s15, 1  ;;  %s431_s15 = sphi %s458_s15, %s14_s15  }
   0x2   : > { %p163_p1 = scmp.lt.s32.totalorder %s431_s15, 3 }
   0x4   : > { %p164_p2 = pnand %p373_p0, %p163_p1 }
   0x5   : > { %s189_s21 = smul.u32 (!%p164_p2), 3, %s369_s16 }
   0x6   : > { %167 = sbr.rel (%p164_p2) target bundleno = 320 (0x140), region = 36 }
   0x7   : > { %p190_p3 = scmp.lt.s32.totalorder (!%p164_p2), %s189_s21, 5 }
   0xb   : > { %v235_v0 = vld [vmem:[%s590_s2 + $0x78] sm:$0xff]  ;;  %v234_v1 = vld [vmem:[%s590_s2 + $0x70] sm:$0xff]  ;;  %v233_v2 = vld [vmem:[%s590_s2 + $0x68] sm:$0xff]  ;;  %s594_s21 = smov (!%p190_p3, %s189_s21), 5  ;;  %vm309_vm0 = vcmask 64512  }
   0xc   : > { %382 = vmatpush.msra.mxu2 %v235_v0  ;;  %238 = vmatpush.msra.mxu0 %v235_v0  ;;  %v232_v3 = vld [vmem:[%s590_s2 + $0x60] sm:$0xff]  ;;  %v231_v4 = vld [vmem:[%s590_s2 + $0x58] sm:$0xff]  ;;  %s374_s28 = sshll.u32 %s594_s21, 2  ;;  %v230_v5 = vld [vmem:[%s590_s2 + $0x50] sm:$0xff]  ;;  %s375_s20 = sshll.u32 %s594_s21, 3 }
   0xd   : > { %v282_v6 = vld [vmem:[%s591_s3 + $0x78] sm:$0xff]  ;;  %v281_v7 = vld [vmem:[%s591_s3 + $0x70] sm:$0xff]  ;;  %v229_v8 = vld [vmem:[%s590_s2 + $0x48] sm:$0xff]  ;;  %s499_s13 = scalar_lea.vmem %s588_s0, %s374_s28  ;;  %s199_s24 = scalar_lea.vmem %s592_s4, %s375_s20 }
   0xe   : > { %383 = vmatpush.msra.mxu2 %v234_v1  ;;  %239 = vmatpush.msra.mxu0 %v234_v1  ;;  %v280_v9 = vld [vmem:[%s591_s3 + $0x68] sm:$0xff]  ;;  %v228_v10 = vld [vmem:[%s590_s2 + $0x40] sm:$0xff]  ;;  %v227_v13 = vld [vmem:[%s590_s2 + $0x38] sm:$0xff] }
   0xf   : > { %398 = vmatpush.msra.mxu3 %v282_v6  ;;  %283 = vmatpush.msra.mxu1 %v282_v6  ;;  %v379_v11 = vld [vmem:[%s499_s13] sm:$0xff]   ;;  %v278_v14 = vld [vmem:[%s591_s3 + $0x58] sm:$0xff]  ;;  %v226_v15 = vld [vmem:[%s590_s2 + $0x30] sm:$0xff] }
  0x10   : > { %384 = vmatpush.msra.mxu2 %v233_v2  ;;  %240 = vmatpush.msra.mxu0 %v233_v2  ;;  %v279_v12 = vld [vmem:[%s591_s3 + $0x60] sm:$0xff]  ;;  %v381_v16 = vunpack.c.h.bf16 %v379_v11  ;;  %v380_v18 = vunpack.c.l.bf16 %v379_v11  ;;  %v277_v19 = vld [vmem:[%s591_s3 + $0x50] sm:$0xff]  ;;  %v225_v20 = vld [vmem:[%s590_s2 + $0x28] sm:$0xff] }
  0x11   : > { %399 = vmatpush.msra.mxu3 %v281_v7  ;;  %284 = vmatpush.msra.mxu1 %v281_v7  ;;  %v422_v17 = vld [vmem:[%s589_s1] ss:$0 sm:$0xff]  ;;  %v276_v21 = vld [vmem:[%s591_s3 + $0x48] sm:$0xff]  ;;  %v423_v24 = vld [vmem:[%s589_s1 + $0x1] ss:$0 sm:$0xff] }
  0x12   : > { %385 = vmatpush.msra.mxu2 %v232_v3  ;;  %241 = vmatpush.msra.mxu0 %v232_v3  ;;  %v224_v22 = vld [vmem:[%s590_s2 + $0x20] sm:$0xff]  ;;  %v210_v23 = vmul.f32 %v422_v17, %v381_v16  ;;  %v209_v25 = vmul.f32 %v422_v17, %v380_v18  ;;  %v203_v26 = vld [vmem:[%s499_s13 + $0x8] sm:$0xf]  ;;  %v223_v28 = vld [vmem:[%s590_s2 + $0x18] sm:$0xff] }
  0x13   : > { %400 = vmatpush.msra.mxu3 %v280_v9  ;;  %285 = vmatpush.msra.mxu1 %v280_v9  ;;  %v275_v27 = vld [vmem:[%s591_s3 + $0x40] sm:$0xff]  ;;  %v274_v29 = vld [vmem:[%s591_s3 + $0x38] sm:$0xff]  ;;  %v222_v30 = vld [vmem:[%s590_s2 + $0x10] sm:$0xff]  ;;  %v206_v32 = vunpack.c.l.bf16 %v203_v26 }
  0x14   : > { %386 = vmatpush.msra.mxu2 %v231_v4  ;;  %242 = vmatpush.msra.mxu0 %v231_v4  ;;  %v215_v31 = vadd.f32 %v423_v24, %v210_v23  ;;  %v214_v33 = vadd.f32 %v423_v24, %v209_v25  ;;  %v273_v34 = vld [vmem:[%s591_s3 + $0x30] sm:$0xff]  ;;  %v221_v35 = vld [vmem:[%s590_s2 + $0x8] sm:$0xff]  ;;  %v220_v37 = vld [vmem:[%s590_s2] sm:$0xff] }
  0x15   : > { %401 = vmatpush.msra.mxu3 %v279_v12  ;;  %286 = vmatpush.msra.mxu1 %v279_v12  ;;  %v272_v36 = vld [vmem:[%s591_s3 + $0x28] sm:$0xff]  ;;  %v211_v39 = vmul.f32 %v422_v17, %v206_v32  ;;  %v271_v41 = vld [vmem:[%s591_s3 + $0x20] sm:$0xff]  ;;  %v270_v43 = vld [vmem:[%s591_s3 + $0x18] sm:$0xff] }
  0x16   : > { %387 = vmatpush.msra.mxu2 %v230_v5  ;;  %243 = vmatpush.msra.mxu0 %v230_v5  ;;  %v218_v38 = vmax.f32 %v215_v31, 0.0  ;;  %v217_v40 = vmax.f32 %v214_v33, 0.0  ;;  %v269_v45 = vld [vmem:[%s591_s3 + $0x10] sm:$0xff]  ;;  %v268_v46 = vld [vmem:[%s591_s3 + $0x8] sm:$0xff]  ;;  %v267_v47 = vld [vmem:[%s591_s3] sm:$0xff] }
  0x17   : > { %402 = vmatpush.msra.mxu3 %v278_v14  ;;  %287 = vmatpush.msra.mxu1 %v278_v14  ;;  %v216_v42 = vadd.f32 %v423_v24, %v211_v39  ;;  %v424_v48 = vld [vmem:[%s589_s1 + $0x2] ss:$0 sm:$0xff] }
  0x18   : > { %388 = vmatpush.msra.mxu2 %v229_v8  ;;  %244 = vmatpush.msra.mxu0 %v229_v8 }
  0x19   : > { %403 = vmatpush.msra.mxu3 %v277_v19  ;;  %288 = vmatpush.msra.mxu1 %v277_v19  ;;  %v219_v44 = vmax.f32 %v216_v42, 0.0 }
  0x1a   : > { %389 = vmatpush.msra.mxu2 %v228_v10  ;;  %245 = vmatpush.msra.mxu0 %v228_v10 }
  0x1b   : > { %404 = vmatpush.msra.mxu3 %v276_v21  ;;  %289 = vmatpush.msra.mxu1 %v276_v21 }
  0x1c   : > { %390 = vmatpush.msra.mxu2 %v227_v13  ;;  %246 = vmatpush.msra.mxu0 %v227_v13 }
  0x1d   : > { %405 = vmatpush.msra.mxu3 %v275_v27  ;;  %290 = vmatpush.msra.mxu1 %v275_v27 }
  0x1e   : > { %391 = vmatpush.msra.mxu2 %v226_v15  ;;  %247 = vmatpush.msra.mxu0 %v226_v15 }
  0x1f   : > { %406 = vmatpush.msra.mxu3 %v274_v29  ;;  %291 = vmatpush.msra.mxu1 %v274_v29 }
  0x20   : > { %392 = vmatpush.msra.mxu2 %v225_v20  ;;  %248 = vmatpush.msra.mxu0 %v225_v20 }
  0x21   : > { %407 = vmatpush.msra.mxu3 %v273_v34  ;;  %292 = vmatpush.msra.mxu1 %v273_v34 }
  0x22   : > { %393 = vmatpush.msra.mxu2 %v224_v22  ;;  %249 = vmatpush.msra.mxu0 %v224_v22 }
  0x23   : > { %408 = vmatpush.msra.mxu3 %v272_v36  ;;  %293 = vmatpush.msra.mxu1 %v272_v36 }
  0x24   : > { %394 = vmatpush.msra.mxu2 %v223_v28  ;;  %250 = vmatpush.msra.mxu0 %v223_v28 }
  0x25   : > { %409 = vmatpush.msra.mxu3 %v271_v41  ;;  %294 = vmatpush.msra.mxu1 %v271_v41 }
  0x26   : > { %395 = vmatpush.msra.mxu2 %v222_v30  ;;  %251 = vmatpush.msra.mxu0 %v222_v30 }
  0x27   : > { %410 = vmatpush.msra.mxu3 %v270_v43  ;;  %295 = vmatpush.msra.mxu1 %v270_v43 }
  0x28   : > { %396 = vmatpush.msra.mxu2 %v221_v35  ;;  %252 = vmatpush.msra.mxu0 %v221_v35 }
  0x29   : > { %411 = vmatpush.msra.mxu3 %v269_v45  ;;  %296 = vmatpush.msra.mxu1 %v269_v45 }
  0x2a   : > { %397 = vmatpush.msra.mxu2 %v220_v37  ;;  %253 = vmatpush.msra.mxu0 %v220_v37 }
  0x2b   : > { %257 = vmatmul.f32.vlgmr.msra.gmra.mxu2 %v218_v38  ;;  %254 = vmatmul.f32.vlgmr.msra.gmra.mxu0 %v217_v40 }
  0x2c   : > { %412 = vmatpush.msra.mxu3 %v268_v46  ;;  %297 = vmatpush.msra.mxu1 %v268_v46 }
  0x2e   : > { %413 = vmatpush.msra.mxu3 %v267_v47  ;;  %298 = vmatpush.msra.mxu1 %v267_v47 }
  0x33   : > { %260 = vmatmul.f32.gmra.mxu2 %v219_v44 }
  0xa8   : > { %v255_v49 = vpop.f32.mrf.mxu0 }
  0xa9   : > { %v256_v50 = vadd.f32 %v424_v48, %v255_v49 }
  0xab   : > { %v264_v51 = vmax.f32 %v256_v50, 0.0 }
  0xad   : > { %299 = vmatmul.f32.vlgmr.msra.gmra.mxu1 %v264_v51 }
  0xae   : > { %v258_v52 = vpop.f32.mrf.mxu2 }
  0xaf   : > { %v259_v53 = vadd.f32 %v424_v48, %v258_v52 }
  0xb1   : > { %v265_v54 = vmax.f32 %v259_v53, 0.0 }
  0xb3   : > { %302 = vmatmul.f32.vlgmr.msra.gmra.mxu3 %v265_v54 }
  0xb6   : > { %v261_v55 = vpop.f32.mrf.mxu2 }
  0xb7   : > { %v262_v56 = vadd.f32 %v424_v48, %v261_v55 }
  0xb9   : > { %v266_v57 = vmax.f32 %v262_v56, 0.0 }
  0xbb   : > { %305 = vmatmul.f32.gmra.mxu3 %v266_v57 }
 0x12a   : > { %v300_v58 = vpop.f32.mrf.mxu1 }
 0x12b   : > { %310 = vst.msk [vmem:[%s199_s24] sm:$0xff] %vm309_vm0, %v300_v58 }
 0x136   : > { %v303_v59 = vpop.f32.mrf.mxu3 }
 0x137   : > { %311 = vst.msk [vmem:[%s199_s24 + $0x8] sm:$0xff] %vm309_vm0, %v303_v59 }
 0x13e   : > { %v306_v60 = vpop.f32.mrf.mxu3 }
 0x13f   : > { %312 = vst.msk [vmem:[%s199_s24 + $0x10] sm:$0xff] %vm309_vm0, %v306_v60 }
 0x140 PF: > { %s14_s15 = sadd.s32 1, %s431_s15  }
 0x141   : > { %p11_p4 = scmp.ge.s32.totalorder %s14_s15, 4  }
 0x143   :  { %13 = sbr.rel (!%p11_p4) target bundleno = 1 (0x1), region = 66 }

// kernel: out_block_forward.2
= control target key start
LH: loop header
LB: loop body
LE: loop exit
PB: predicated region body
PF: predicated region fallthrough
CT: control target
= control target key end

     0   :  { %s6205_s12 = smov 0   ;;  %s7406_s0 = inlined_call_operand.vmem [shape: bf16[48,5292], index: 0, kind: input, shape index: {}]   ;;  %s7407_s1 = inlined_call_operand.vmem [shape: bf16[5376,128], index: 1, kind: input, shape index: {}]   ;;  %s7408_s2 = inlined_call_operand.vmem [shape: bf16[48,128], index: 2, kind: output, shape index: {0}]   ;;  %s7409_s3 = inlined_call_operand.vmem [shape: f32[16,128], index: 3, kind: output, shape index: {1}]  }
   0x1 LB: > { %s6211_s13 = sadd.s32 4294967295, %s6181_s12   ;;  %p4257_p0 = scmp.ge.s32.totalorder %s6181_s12, 1  ;;  %s6181_s12 = sphi %s6205_s12, %s14_s12  }
   0x2   : > { %p142_p1 = scmp.lt.s32.totalorder %s6181_s12, 3 }
   0x4   : > { %p143_p2 = pnand %p4257_p0, %p142_p1 }
   0x5   : > { %s171_s7 = smul.u32 (!%p143_p2), 3, %s6211_s13  ;;  %p184_p4 = scmp.lt.s32.totalorder (!%p143_p2), %s6211_s13, 1 }
   0x6   : > { %146 = sbr.rel (%p143_p2) target bundleno = 522 (0x20a), region = 28 }
   0x7   : > { %p172_p3 = scmp.lt.s32.totalorder (!%p143_p2), %s171_s7, 5  ;;  %s4123_s25 = smul.u32 (!%p143_p2), 24, %s6211_s13 }
   0x9   : > { %s4124_s26 = ssub.s32 (!%p143_p2), 48, %s4123_s25 }
   0xb   : > { %v5794_v0 = vld [vmem:[%s7407_s1 + $0xb8] sm:$0xff]  ;;  %v5793_v4 = vld [vmem:[%s7407_s1 + $0xb0] sm:$0xff]  ;;  %v5792_v8 = vld [vmem:[%s7407_s1 + $0xa8] sm:$0xff]  ;;  %s7411_s7 = smov (!%p172_p3, %s171_s7), 5  ;;  %vm6183_vm1 = vmmov 1  }
   0xc   : > { %v5802_v1 = vld [vmem:[%s7407_s1 + $0xf8] sm:$0xff]  ;;  %372 = vmatpush.bf16.msra.mxu0 %v5794_v0  ;;  %v5801_v5 = vld [vmem:[%s7407_s1 + $0xf0] sm:$0xff]  ;;  %v5800_v9 = vld [vmem:[%s7407_s1 + $0xe8] sm:$0xff]  ;;  %s6164_s8 = smul.u32 168, %s7411_s7 }
   0xd   : > { %v5776_v2 = vld [vmem:[%s7407_s1 + $0x38] sm:$0xff]  ;;  %390 = vmatpush.bf16.msra.mxu1 %v5802_v1  ;;  %v5775_v6 = vld [vmem:[%s7407_s1 + $0x30] sm:$0xff]  ;;  %v5774_v10 = vld [vmem:[%s7407_s1 + $0x28] sm:$0xff] }
   0xe   : > { %v5784_v3 = vld [vmem:[%s7407_s1 + $0x78] sm:$0xff]  ;;  %521 = vmatpush.bf16.msra.mxu2 %v5776_v2  ;;  %v5783_v7 = vld [vmem:[%s7407_s1 + $0x70] sm:$0xff]  ;;  %v5782_v11 = vld [vmem:[%s7407_s1 + $0x68] sm:$0xff]  ;;  %s6300_s21 = scalar_lea.vmem %s7406_s0, %s6164_s8 }
   0xf   : > { %539 = vmatpush.bf16.msra.mxu3 %v5784_v3  ;;  %v5791_v12 = vld [vmem:[%s7407_s1 + $0xa0] sm:$0xff]  ;;  %v5790_v16 = vld [vmem:[%s7407_s1 + $0x98] sm:$0xff]  ;;  %v5789_v20 = vld [vmem:[%s7407_s1 + $0x90] sm:$0xff] }
  0x10   : > { %373 = vmatpush.bf16.msra.mxu0 %v5793_v4  ;;  %v5799_v13 = vld [vmem:[%s7407_s1 + $0xe0] sm:$0xff]  ;;  %v5798_v17 = vld [vmem:[%s7407_s1 + $0xd8] sm:$0xff]  ;;  %v5797_v21 = vld [vmem:[%s7407_s1 + $0xd0] sm:$0xff] }
  0x11   : > { %391 = vmatpush.bf16.msra.mxu1 %v5801_v5  ;;  %v5773_v14 = vld [vmem:[%s7407_s1 + $0x20] sm:$0xff]  ;;  %v5772_v18 = vld [vmem:[%s7407_s1 + $0x18] sm:$0xff]  ;;  %v5771_v22 = vld [vmem:[%s7407_s1 + $0x10] sm:$0xff] }
  0x12   : > { %522 = vmatpush.bf16.msra.mxu2 %v5775_v6  ;;  %v5781_v15 = vld [vmem:[%s7407_s1 + $0x60] sm:$0xff]  ;;  %v5780_v19 = vld [vmem:[%s7407_s1 + $0x58] sm:$0xff]  ;;  %v5779_v23 = vld [vmem:[%s7407_s1 + $0x50] sm:$0xff] }
  0x13   : > { %540 = vmatpush.bf16.msra.mxu3 %v5783_v7  ;;  %v5788_v24 = vld [vmem:[%s7407_s1 + $0x88] sm:$0xff]  ;;  %v5787_v28 = vld [vmem:[%s7407_s1 + $0x80] sm:$0xff]  ;;  %v5786_v33 = vld [vmem:[%s6300_s21 + $0xac] sm:$0xf0] }
  0x14   : > { %374 = vmatpush.bf16.msra.mxu0 %v5792_v8  ;;  %v5796_v25 = vld [vmem:[%s7407_s1 + $0xc8] sm:$0xff]  ;;  %v5795_v29 = vld [vmem:[%s7407_s1 + $0xc0] sm:$0xff]  ;;  %v4265_v35 = vld [vmem:[%s6300_s21 + $0xb0] sm:$0xf0] }
  0x15   : > { %392 = vmatpush.bf16.msra.mxu1 %v5800_v9  ;;  %v5770_v26 = vld [vmem:[%s7407_s1 + $0x8] sm:$0xff]  ;;  %v5769_v30 = vld [vmem:[%s7407_s1] sm:$0xff]  ;;  %v5812_v40 = vld [vmem:[%s7407_s1 + $0x138] sm:$0xff] }
  0x16   : > { %523 = vmatpush.bf16.msra.mxu2 %v5774_v10  ;;  %v5778_v27 = vld [vmem:[%s7407_s1 + $0x48] sm:$0xff]  ;;  %v5777_v31 = vld [vmem:[%s7407_s1 + $0x40] sm:$0xff]  ;;  %v5820_v41 = vld [vmem:[%s7407_s1 + $0x178] sm:$0xff] }
  0x17   : > { %541 = vmatpush.bf16.msra.mxu3 %v5782_v11  ;;  %v4263_v32 = vld [vmem:[%s6300_s21 + $0x8] sm:$0xf]  ;;  %v5785_v34 = vld [vmem:[%s6300_s21 + $0xc] sm:$0xf]  ;;  %v4335_v36 = vld [vmem:[%s6300_s21] sm:$0xf] }
  0x18   : > { %375 = vmatpush.bf16.msra.mxu0 %v5791_v12  ;;  %v5768_v37 = vld [vmem:[%s6300_s21 + $0xa4] sm:$0xf0]  ;;  %v5767_v38 = vld [vmem:[%s6300_s21 + $0x4] sm:$0xf]  ;;  %v4337_v39 = vld [vmem:[%s6300_s21 + $0xa8] sm:$0xf0]  ;;  %v4264_v42 = vor.u32 %v5786_v33, %v4263_v32  ;;  %v4268_v43 = vor.u32 %v5785_v34, %v4265_v35 }
  0x19   : > { %393 = vmatpush.bf16.msra.mxu1 %v5799_v13  ;;  %v4336_v44 = vor.u32 %v5768_v37, %v4335_v36  ;;  %v4340_v45 = vor.u32 %v5767_v38, %v4337_v39  ;;  %v5830_v46 = vld [vmem:[%s7407_s1 + $0x1b8] sm:$0xff]  ;;  %v5811_v48 = vld [vmem:[%s7407_s1 + $0x130] sm:$0xff]  ;;  %v5810_v52 = vld [vmem:[%s7407_s1 + $0x128] sm:$0xff] }
  0x1a   : > { %524 = vmatpush.bf16.msra.mxu2 %v5773_v14  ;;  %v5838_v47 = vld [vmem:[%s7407_s1 + $0x1f8] sm:$0xff]  ;;  %v5819_v49 = vld [vmem:[%s7407_s1 + $0x170] sm:$0xff]  ;;  %v5818_v53 = vld [vmem:[%s7407_s1 + $0x168] sm:$0xff] }
  0x1b   : > { %542 = vmatpush.bf16.msra.mxu3 %v5781_v15  ;;  %v5829_v50 = vld [vmem:[%s7407_s1 + $0x1b0] sm:$0xff]  ;;  %v226_v54 = vld [vmem:[%s6300_s21 + $0x158] sm:$0xff]  ;;  %v5828_v55 = vld [vmem:[%s7407_s1 + $0x1a8] sm:$0xff] }
  0x1c   : > { %376 = vmatpush.bf16.msra.mxu0 %v5790_v16  ;;  %v5837_v51 = vld [vmem:[%s7407_s1 + $0x1f0] sm:$0xff]  ;;  %v5836_v56 = vld [vmem:[%s7407_s1 + $0x1e8] sm:$0xff]  ;;  %v5809_v58 = vld [vmem:[%s7407_s1 + $0x120] sm:$0xff]  ;;  %v266_v60 = vunpack.c.l.b16 %v226_v54  ;;  %v267_v61 = vunpack.c.h.b16 %v226_v54 }
  0x1d   : > { %394 = vmatpush.bf16.msra.mxu1 %v5798_v17  ;;  %v191_v57 = vld [vmem:[%s6300_s21 + $0x150] sm:$0xff]  ;;  %v5817_v59 = vld [vmem:[%s7407_s1 + $0x160] sm:$0xff]  ;;  %v5808_v2 = vld [vmem:[%s7407_s1 + $0x118] sm:$0xff] }
  0x1e   : > { %525 = vmatpush.bf16.msra.mxu2 %v5772_v18  ;;  %v415_v62 = vunpack.c.l.b16 %v191_v57  ;;  %v416_v63 = vunpack.c.h.b16 %v191_v57  ;;  %v5827_v0 = vld [vmem:[%s7407_s1 + $0x1a0] sm:$0xff]  ;;  %v5816_v3 = vld [vmem:[%s7407_s1 + $0x158] sm:$0xff]  ;;  %v270_v4 = vpack.c.b16 %v266_v60, %v266_v60  ;;  %v271_v5 = vpack.c.b16 %v267_v61, %v267_v61  ;;  %v5807_v10 = vld [vmem:[%s7407_s1 + $0x110] sm:$0xff] }
  0x1f   : > { %543 = vmatpush.bf16.msra.mxu3 %v5780_v19  ;;  %v5835_v1 = vld [vmem:[%s7407_s1 + $0x1e0] sm:$0xff]  ;;  %v5826_v8 = vld [vmem:[%s7407_s1 + $0x198] sm:$0xff]  ;;  %v5815_v11 = vld [vmem:[%s7407_s1 + $0x150] sm:$0xff] }
  0x20   : > { %377 = vmatpush.bf16.msra.mxu0 %v5789_v20  ;;  %v419_v6 = vpack.c.b16 %v415_v62, %v415_v62  ;;  %v420_v7 = vpack.c.b16 %v416_v63, %v416_v63  ;;  %v5834_v9 = vld [vmem:[%s7407_s1 + $0x1d8] sm:$0xff]  ;;  %v5825_v12 = vld [vmem:[%s7407_s1 + $0x190] sm:$0xff]  ;;  %v5806_v14 = vld [vmem:[%s7407_s1 + $0x108] sm:$0xff] }
  0x21   : > { %395 = vmatpush.bf16.msra.mxu1 %v5797_v21  ;;  %v5833_v13 = vld [vmem:[%s7407_s1 + $0x1d0] sm:$0xff]  ;;  %v5814_v15 = vld [vmem:[%s7407_s1 + $0x148] sm:$0xff]  ;;  %v5805_v18 = vld [vmem:[%s7407_s1 + $0x100] sm:$0xff] }
  0x22   : > { %526 = vmatpush.bf16.msra.mxu2 %v5771_v22  ;;  %v5824_v16 = vld [vmem:[%s7407_s1 + $0x188] sm:$0xff]  ;;  %v5813_v19 = vld [vmem:[%s7407_s1 + $0x140] sm:$0xff]  ;;  %v4407_v20 = vld [vmem:[%s6300_s21 + $0x10] sm:$0xf] }
  0x23   : > { %544 = vmatpush.bf16.msra.mxu3 %v5779_v23  ;;  %v5832_v17 = vld [vmem:[%s7407_s1 + $0x1c8] sm:$0xff]  ;;  %v5823_v21 = vld [vmem:[%s7407_s1 + $0x180] sm:$0xff]  ;;  %v5804_v23 = vld [vmem:[%s6300_s21 + $0xb4] sm:$0xf0] }
  0x24   : > { %378 = vmatpush.bf16.msra.mxu0 %v5788_v24  ;;  %v5831_v22 = vld [vmem:[%s7407_s1 + $0x1c0] sm:$0xff]  ;;  %v5848_v24 = vld [vmem:[%s7407_s1 + $0x238] sm:$0xff]  ;;  %v4408_v34 = vor.u32 %v5804_v23, %v4407_v20  ;;  %v5847_v38 = vld [vmem:[%s7407_s1 + $0x230] sm:$0xff] }
  0x25   : > { %396 = vmatpush.bf16.msra.mxu1 %v5796_v25  ;;  %v5856_v25 = vld [vmem:[%s7407_s1 + $0x278] sm:$0xff]  ;;  %v5855_v39 = vld [vmem:[%s7407_s1 + $0x270] sm:$0xff] }
  0x26   : > { %527 = vmatpush.bf16.msra.mxu2 %v5770_v26  ;;  %v5803_v26 = vld [vmem:[%s6300_s21 + $0x14] sm:$0xf]  ;;  %v5866_v32 = vld [vmem:[%s7407_s1 + $0x2b8] sm:$0xff] }
  0x27   : > { %545 = vmatpush.bf16.msra.mxu3 %v5778_v27  ;;  %v4409_v27 = vld [vmem:[%s6300_s21 + $0xb8] sm:$0xf0]  ;;  %v4625_v23 = vld [vmem:[%s6300_s21 + $0xd0] sm:$0xf0] }
  0x28   : > { %379 = vmatpush.bf16.msra.mxu0 %v5787_v28  ;;  %v4479_v28 = vld [vmem:[%s6300_s21 + $0x18] sm:$0xf]  ;;  %v4412_v35 = vor.u32 %v5803_v26, %v4409_v27 }
  0x29   : > { %397 = vmatpush.bf16.msra.mxu1 %v5795_v29  ;;  %v5822_v29 = vld [vmem:[%s6300_s21 + $0xbc] sm:$0xf0]  ;;  %v5874_v33 = vld [vmem:[%s7407_s1 + $0x2f8] sm:$0xff] }
  0x2a   : > { %528 = vmatpush.bf16.msra.mxu2 %v5769_v30  ;;  %v5821_v30 = vld [vmem:[%s6300_s21 + $0x1c] sm:$0xf]  ;;  %v4480_v36 = vor.u32 %v5822_v29, %v4479_v28  ;;  %v5883_v28 = vld [vmem:[%s7407_s1 + $0x330] sm:$0xff] }
  0x2b   : > { %546 = vmatpush.bf16.msra.mxu3 %v5777_v31  ;;  %380 = vmatmul.bf16.vlgmr.msra.gmra.mxu0 %v4264_v42  ;;  %v4481_v31 = vld [vmem:[%s6300_s21 + $0xc0] sm:$0xf0]  ;;  %v5846_v42 = vld [vmem:[%s7407_s1 + $0x228] sm:$0xff]  ;;  %v5852_v57 = vld [vmem:[%s7407_s1 + $0x258] sm:$0xff] }
  0x2c   : > { %705 = vmatpush.bf16.msrb.mxu0 %v5812_v40  ;;  %398 = vmatmul.bf16.vlgmr.msra.gmra.mxu1 %v4268_v43  ;;  %v4484_v37 = vor.u32 %v5821_v30, %v4481_v31  ;;  %v5865_v40 = vld [vmem:[%s7407_s1 + $0x2b0] sm:$0xff]  ;;  %v5854_v43 = vld [vmem:[%s7407_s1 + $0x268] sm:$0xff]  ;;  %v5910_v20 = vld [vmem:[%s7407_s1 + $0x3f8] sm:$0xff] }
  0x2d   : > { %723 = vmatpush.bf16.msrb.mxu1 %v5820_v41  ;;  %529 = vmatmul.bf16.vlgmr.msra.gmra.mxu2 %v4336_v44  ;;  %v5873_v41 = vld [vmem:[%s7407_s1 + $0x2f0] sm:$0xff]  ;;  %v5864_v44 = vld [vmem:[%s7407_s1 + $0x2a8] sm:$0xff] }
  0x2e   : > { %547 = vmatmul.bf16.vlgmr.msra.gmra.mxu3 %v4340_v45  ;;  %892 = vmatpush.bf16.msrb.mxu2 %v5830_v46  ;;  %v5872_v45 = vld [vmem:[%s7407_s1 + $0x2e8] sm:$0xff]  ;;  %v559_v46 = vld [vmem:[%s6300_s21 + $0x160] sm:$0xff]  ;;  %v5891_v29 = vld [vmem:[%s7407_s1 + $0x370] sm:$0xff] }
  0x2f   : > { %910 = vmatpush.bf16.msrb.mxu3 %v5838_v47  ;;  %v5845_v47 = vld [vmem:[%s7407_s1 + $0x220] sm:$0xff]  ;;  %v5901_v30 = vld [vmem:[%s7407_s1 + $0x3b0] sm:$0xff] }
  0x30   : > { %706 = vmatpush.bf16.msrb.mxu0 %v5811_v48  ;;  %v5853_v48 = vld [vmem:[%s7407_s1 + $0x260] sm:$0xff]  ;;  %v5909_v31 = vld [vmem:[%s7407_s1 + $0x3f0] sm:$0xff] }
  0x31   : > { %724 = vmatpush.bf16.msrb.mxu1 %v5819_v49  ;;  %v746_v49 = vld [vmem:[%s6300_s21 + $0x168] sm:$0xff] }
  0x32   : > { %893 = vmatpush.bf16.msrb.mxu2 %v5829_v50  ;;  %v5863_v50 = vld [vmem:[%s7407_s1 + $0x2a0] sm:$0xff]  ;;  %v786_v54 = vunpack.c.l.b16 %v746_v49 }
  0x33   : > { %911 = vmatpush.bf16.msrb.mxu3 %v5837_v51  ;;  %v5871_v51 = vld [vmem:[%s7407_s1 + $0x2e0] sm:$0xff] }
  0x34   : > { %707 = vmatpush.bf16.msrb.mxu0 %v5810_v52  ;;  %v599_v52 = vunpack.c.l.b16 %v559_v46  ;;  %v790_v62 = vpack.c.b16 %v786_v54, %v786_v54  ;;  %v5879_v54 = vld [vmem:[%s7407_s1 + $0x310] sm:$0xff] }
  0x35   : > { %725 = vmatpush.bf16.msrb.mxu1 %v5818_v53  ;;  %v600_v53 = vunpack.c.h.b16 %v559_v46  ;;  %v5880_v46 = vld [vmem:[%s7407_s1 + $0x318] sm:$0xff] }
  0x36   : > { %894 = vmatpush.bf16.msrb.mxu2 %v5828_v55  ;;  %v787_v55 = vunpack.c.h.b16 %v746_v49  ;;  %v603_v60 = vpack.c.b16 %v599_v52, %v599_v52  ;;  %v5906_v49 = vld [vmem:[%s7407_s1 + $0x3d8] sm:$0xff] }
  0x37   : > { %912 = vmatpush.bf16.msrb.mxu3 %v5836_v56  ;;  %v5844_v56 = vld [vmem:[%s7407_s1 + $0x218] sm:$0xff]  ;;  %v604_v61 = vpack.c.b16 %v600_v53, %v600_v53 }
  0x38   : > { %708 = vmatpush.bf16.msrb.mxu0 %v5809_v58  ;;  %v5862_v58 = vld [vmem:[%s7407_s1 + $0x298] sm:$0xff]  ;;  %v791_v63 = vpack.c.b16 %v787_v55, %v787_v55  ;;  %v5887_v55 = vld [vmem:[%s7407_s1 + $0x350] sm:$0xff] }
  0x39   : > { %726 = vmatpush.bf16.msrb.mxu1 %v5817_v59  ;;  %v5870_v59 = vld [vmem:[%s7407_s1 + $0x2d8] sm:$0xff] }
  0x3a   : > { %895 = vmatpush.bf16.msrb.mxu2 %v5827_v0  ;;  %v5843_v0 = vld [vmem:[%s7407_s1 + $0x210] sm:$0xff] }
  0x3b   : > { %913 = vmatpush.bf16.msrb.mxu3 %v5835_v1  ;;  %385 = vmatmul.bf16.gmra.mxu0 %v270_v4  ;;  %v5851_v1 = vld [vmem:[%s7407_s1 + $0x250] sm:$0xff]  ;;  %v5842_v4 = vld [vmem:[%s7407_s1 + $0x208] sm:$0xff] }
  0x3c   : > { %709 = vmatpush.bf16.msrb.mxu0 %v5808_v2  ;;  %403 = vmatmul.bf16.gmra.mxu1 %v271_v5  ;;  %v5861_v2 = vld [vmem:[%s7407_s1 + $0x290] sm:$0xff]  ;;  %v5850_v5 = vld [vmem:[%s7407_s1 + $0x248] sm:$0xff] }
  0x3d   : > { %727 = vmatpush.bf16.msrb.mxu1 %v5816_v3  ;;  %534 = vmatmul.bf16.gmra.mxu2 %v419_v6  ;;  %v5869_v3 = vld [vmem:[%s7407_s1 + $0x2d0] sm:$0xff]  ;;  %v5860_v6 = vld [vmem:[%s7407_s1 + $0x288] sm:$0xff] }
  0x3e   : > { %552 = vmatmul.bf16.gmra.mxu3 %v420_v7  ;;  %896 = vmatpush.bf16.msrb.mxu2 %v5826_v8  ;;  %v5868_v7 = vld [vmem:[%s7407_s1 + $0x2c8] sm:$0xff]  ;;  %v5841_v8 = vld [vmem:[%s7407_s1 + $0x200] sm:$0xff] }
  0x3f   : > { %914 = vmatpush.bf16.msrb.mxu3 %v5834_v9  ;;  %v5849_v9 = vld [vmem:[%s7407_s1 + $0x240] sm:$0xff] }
  0x40   : > { %710 = vmatpush.bf16.msrb.mxu0 %v5807_v10  ;;  %v5859_v10 = vld [vmem:[%s7407_s1 + $0x280] sm:$0xff] }
  0x41   : > { %728 = vmatpush.bf16.msrb.mxu1 %v5815_v11  ;;  %v5867_v11 = vld [vmem:[%s7407_s1 + $0x2c0] sm:$0xff] }
  0x42   : > { %897 = vmatpush.bf16.msrb.mxu2 %v5825_v12  ;;  %v4551_v12 = vld [vmem:[%s6300_s21 + $0x20] sm:$0xf] }
  0x43   : > { %915 = vmatpush.bf16.msrb.mxu3 %v5833_v13  ;;  %v5840_v13 = vld [vmem:[%s6300_s21 + $0xc4] sm:$0xf0] }
  0x44   : > { %711 = vmatpush.bf16.msrb.mxu0 %v5806_v14  ;;  %v5839_v14 = vld [vmem:[%s6300_s21 + $0x24] sm:$0xf] }
  0x45   : > { %729 = vmatpush.bf16.msrb.mxu1 %v5814_v15  ;;  %v4553_v15 = vld [vmem:[%s6300_s21 + $0xc8] sm:$0xf0] }
  0x46   : > { %898 = vmatpush.bf16.msrb.mxu2 %v5824_v16  ;;  %v5884_v16 = vld [vmem:[%s7407_s1 + $0x338] sm:$0xff] }
  0x47   : > { %916 = vmatpush.bf16.msrb.mxu3 %v5832_v17  ;;  %v5892_v17 = vld [vmem:[%s7407_s1 + $0x378] sm:$0xff] }
  0x48   : > { %712 = vmatpush.bf16.msrb.mxu0 %v5805_v18  ;;  %v4623_v18 = vld [vmem:[%s6300_s21 + $0x28] sm:$0xf] }
  0x49   : > { %730 = vmatpush.bf16.msrb.mxu1 %v5813_v19  ;;  %v5902_v19 = vld [vmem:[%s7407_s1 + $0x3b8] sm:$0xff] }
  0x4a   : > { %899 = vmatpush.bf16.msrb.mxu2 %v5823_v21  ;;  %v5858_v21 = vld [vmem:[%s6300_s21 + $0xcc] sm:$0xf0] }
  0x4b   : > { %917 = vmatpush.bf16.msrb.mxu3 %v5831_v22  ;;  %713 = vmatmul.bf16.vlgmr.msrb.gmra.mxu0 %v4408_v34  ;;  %v5857_v22 = vld [vmem:[%s6300_s21 + $0x2c] sm:$0xf]  ;;  %v4624_v26 = vor.u32 %v5858_v21, %v4623_v18  ;;  %v5919_v18 = vld [vmem:[%s7407_s1 + $0x430] sm:$0xff] }
  0x4c   : > { %1079 = vmatpush.bf16.msra.mxu0 %v5848_v24  ;;  %731 = vmatmul.bf16.vlgmr.msrb.gmra.mxu1 %v4412_v35  ;;  %v4552_v24 = vor.u32 %v5840_v13, %v4551_v12  ;;  %v4628_v27 = vor.u32 %v5857_v22, %v4625_v23  ;;  %v5900_v34 = vld [vmem:[%s7407_s1 + $0x3a8] sm:$0xff]  ;;  %v5893_v12 = vld [vmem:[%s6300_s21 + $0x3c] sm:$0xf]  ;;  %v4769_v13 = vld [vmem:[%s6300_s21 + $0xe0] sm:$0xf0] }
  0x4d   : > { %1097 = vmatpush.bf16.msra.mxu1 %v5856_v25  ;;  %900 = vmatmul.bf16.vlgmr.msrb.gmra.mxu2 %v4480_v36  ;;  %v4556_v25 = vor.u32 %v5839_v14, %v4553_v15  ;;  %v5908_v35 = vld [vmem:[%s7407_s1 + $0x3e8] sm:$0xff]  ;;  %v933_v36 = vld [vmem:[%s6300_s21 + $0x170] sm:$0xff] }
  0x4e   : > { %1266 = vmatpush.bf16.msra.mxu2 %v5866_v32  ;;  %918 = vmatmul.bf16.vlgmr.msrb.gmra.mxu3 %v4484_v37  ;;  %v5882_v32 = vld [vmem:[%s7407_s1 + $0x328] sm:$0xff]  ;;  %v5881_v37 = vld [vmem:[%s7407_s1 + $0x320] sm:$0xff]  ;;  %v5945_v21 = vld [vmem:[%s7407_s1 + $0x4f0] sm:$0xff] }
  0x4f   : > { %1284 = vmatpush.bf16.msra.mxu3 %v5874_v33  ;;  %v5890_v33 = vld [vmem:[%s7407_s1 + $0x368] sm:$0xff] }
  0x50   : > { %1080 = vmatpush.bf16.msra.mxu0 %v5847_v38  ;;  %v5889_v38 = vld [vmem:[%s7407_s1 + $0x360] sm:$0xff]  ;;  %v5918_v22 = vld [vmem:[%s7407_s1 + $0x428] sm:$0xff] }
  0x51   : > { %1098 = vmatpush.bf16.msra.mxu1 %v5855_v39  ;;  %v1120_v39 = vld [vmem:[%s6300_s21 + $0x178] sm:$0xff]  ;;  %v5926_v23 = vld [vmem:[%s7407_s1 + $0x468] sm:$0xff] }
  0x52   : > { %1267 = vmatpush.bf16.msra.mxu2 %v5865_v40  ;;  %v5899_v40 = vld [vmem:[%s7407_s1 + $0x3a0] sm:$0xff] }
  0x53   : > { %1285 = vmatpush.bf16.msra.mxu3 %v5873_v41  ;;  %v5907_v41 = vld [vmem:[%s7407_s1 + $0x3e0] sm:$0xff] }
  0x54   : > { %1081 = vmatpush.bf16.msra.mxu0 %v5846_v42  ;;  %v973_v42 = vunpack.c.l.b16 %v933_v36 }
  0x55   : > { %1099 = vmatpush.bf16.msra.mxu1 %v5854_v43  ;;  %v974_v43 = vunpack.c.h.b16 %v933_v36  ;;  %v5916_v36 = vld [vmem:[%s7407_s1 + $0x418] sm:$0xff] }
  0x56   : > { %1268 = vmatpush.bf16.msra.mxu2 %v5864_v44  ;;  %v1160_v44 = vunpack.c.l.b16 %v1120_v39 }
  0x57   : > { %1286 = vmatpush.bf16.msra.mxu3 %v5872_v45  ;;  %v1161_v45 = vunpack.c.h.b16 %v1120_v39  ;;  %v5942_v39 = vld [vmem:[%s7407_s1 + $0x4d8] sm:$0xff] }
  0x58   : > { %1082 = vmatpush.bf16.msra.mxu0 %v5845_v47  ;;  %v5888_v47 = vld [vmem:[%s7407_s1 + $0x358] sm:$0xff]  ;;  %v1164_v52 = vpack.c.b16 %v1160_v44, %v1160_v44  ;;  %v5915_v44 = vld [vmem:[%s7407_s1 + $0x410] sm:$0xff] }
  0x59   : > { %1100 = vmatpush.bf16.msra.mxu1 %v5853_v48  ;;  %v5898_v48 = vld [vmem:[%s7407_s1 + $0x398] sm:$0xff]  ;;  %v1165_v53 = vpack.c.b16 %v1161_v45, %v1161_v45  ;;  %v5923_v45 = vld [vmem:[%s7407_s1 + $0x450] sm:$0xff] }
  0x5a   : > { %1269 = vmatpush.bf16.msra.mxu2 %v5863_v50  ;;  %v977_v50 = vpack.c.b16 %v973_v42, %v973_v42 }
  0x5b   : > { %1287 = vmatpush.bf16.msra.mxu3 %v5871_v51  ;;  %718 = vmatmul.bf16.gmra.mxu0 %v603_v60  ;;  %v978_v51 = vpack.c.b16 %v974_v43, %v974_v43  ;;  %v5896_v60 = vld [vmem:[%s7407_s1 + $0x388] sm:$0xff] }
  0x5c   : > { %1083 = vmatpush.bf16.msra.mxu0 %v5844_v56  ;;  %736 = vmatmul.bf16.gmra.mxu1 %v604_v61  ;;  %v5897_v56 = vld [vmem:[%s7407_s1 + $0x390] sm:$0xff]  ;;  %v5904_v61 = vld [vmem:[%s7407_s1 + $0x3c8] sm:$0xff] }
  0x5d   : > { %1101 = vmatpush.bf16.msra.mxu1 %v5852_v57  ;;  %905 = vmatmul.bf16.gmra.mxu2 %v790_v62  ;;  %v5905_v57 = vld [vmem:[%s7407_s1 + $0x3d0] sm:$0xff]  ;;  %v5877_v62 = vld [vmem:[%s7407_s1 + $0x300] sm:$0xff] }
  0x5e   : > { %1270 = vmatpush.bf16.msra.mxu2 %v5862_v58  ;;  %923 = vmatmul.bf16.gmra.mxu3 %v791_v63  ;;  %v5878_v58 = vld [vmem:[%s7407_s1 + $0x308] sm:$0xff]  ;;  %v5885_v63 = vld [vmem:[%s7407_s1 + $0x340] sm:$0xff] }
  0x5f   : > { %1288 = vmatpush.bf16.msra.mxu3 %v5870_v59  ;;  %v5886_v59 = vld [vmem:[%s7407_s1 + $0x348] sm:$0xff] }
  0x60   : > { %1084 = vmatpush.bf16.msra.mxu0 %v5843_v0  ;;  %v5895_v0 = vld [vmem:[%s7407_s1 + $0x380] sm:$0xff] }
  0x61   : > { %1102 = vmatpush.bf16.msra.mxu1 %v5851_v1  ;;  %v5903_v1 = vld [vmem:[%s7407_s1 + $0x3c0] sm:$0xff] }
  0x62   : > { %1271 = vmatpush.bf16.msra.mxu2 %v5861_v2  ;;  %v4695_v2 = vld [vmem:[%s6300_s21 + $0x30] sm:$0xf] }
  0x63   : > { %1289 = vmatpush.bf16.msra.mxu3 %v5869_v3  ;;  %v5876_v3 = vld [vmem:[%s6300_s21 + $0xd4] sm:$0xf0] }
  0x64   : > { %1085 = vmatpush.bf16.msra.mxu0 %v5842_v4  ;;  %v5875_v4 = vld [vmem:[%s6300_s21 + $0x34] sm:$0xf]  ;;  %v4696_v14 = vor.u32 %v5876_v3, %v4695_v2  ;;  %v5929_v2 = vld [vmem:[%s6300_s21 + $0x4c] sm:$0xf] }
  0x65   : > { %1103 = vmatpush.bf16.msra.mxu1 %v5850_v5  ;;  %v4697_v5 = vld [vmem:[%s6300_s21 + $0xd8] sm:$0xf0]  ;;  %v4913_v3 = vld [vmem:[%s6300_s21 + $0xf0] sm:$0xf0] }
  0x66   : > { %1272 = vmatpush.bf16.msra.mxu2 %v5860_v6  ;;  %v5920_v6 = vld [vmem:[%s7407_s1 + $0x438] sm:$0xff]  ;;  %v4700_v15 = vor.u32 %v5875_v4, %v4697_v5 }
  0x67   : > { %1290 = vmatpush.bf16.msra.mxu3 %v5868_v7  ;;  %v5928_v7 = vld [vmem:[%s7407_s1 + $0x478] sm:$0xff] }
  0x68   : > { %1086 = vmatpush.bf16.msra.mxu0 %v5841_v8  ;;  %v4767_v8 = vld [vmem:[%s6300_s21 + $0x38] sm:$0xf] }
  0x69   : > { %1104 = vmatpush.bf16.msra.mxu1 %v5849_v9  ;;  %v5938_v9 = vld [vmem:[%s7407_s1 + $0x4b8] sm:$0xff] }
  0x6a   : > { %1273 = vmatpush.bf16.msra.mxu2 %v5859_v10  ;;  %v5946_v10 = vld [vmem:[%s7407_s1 + $0x4f8] sm:$0xff] }
  0x6b   : > { %1291 = vmatpush.bf16.msra.mxu3 %v5867_v11  ;;  %1087 = vmatmul.bf16.vlgmr.msra.gmra.mxu0 %v4552_v24  ;;  %v5894_v11 = vld [vmem:[%s6300_s21 + $0xdc] sm:$0xf0]  ;;  %v5936_v24 = vld [vmem:[%s7407_s1 + $0x4a8] sm:$0xff] }
  0x6c   : > { %1453 = vmatpush.bf16.msrb.mxu0 %v5884_v16  ;;  %1105 = vmatmul.bf16.vlgmr.msra.gmra.mxu1 %v4556_v25  ;;  %v4768_v16 = vor.u32 %v5894_v11, %v4767_v8  ;;  %v5944_v25 = vld [vmem:[%s7407_s1 + $0x4e8] sm:$0xff]  ;;  %v5955_v11 = vld [vmem:[%s7407_s1 + $0x530] sm:$0xff] }
  0x6d   : > { %1471 = vmatpush.bf16.msrb.mxu1 %v5892_v17  ;;  %1274 = vmatmul.bf16.vlgmr.msra.gmra.mxu2 %v4624_v26  ;;  %v4772_v17 = vor.u32 %v5893_v12, %v4769_v13  ;;  %v1307_v26 = vld [vmem:[%s6300_s21 + $0x180] sm:$0xff]  ;;  %v5963_v12 = vld [vmem:[%s7407_s1 + $0x570] sm:$0xff] }
  0x6e   : > { %1640 = vmatpush.bf16.msrb.mxu2 %v5902_v19  ;;  %1292 = vmatmul.bf16.vlgmr.msra.gmra.mxu3 %v4628_v27  ;;  %v5927_v19 = vld [vmem:[%s7407_s1 + $0x470] sm:$0xff]  ;;  %v5917_v27 = vld [vmem:[%s7407_s1 + $0x420] sm:$0xff] }
  0x6f   : > { %1658 = vmatpush.bf16.msrb.mxu3 %v5910_v20  ;;  %v5937_v20 = vld [vmem:[%s7407_s1 + $0x4b0] sm:$0xff] }
  0x70   : > { %1454 = vmatpush.bf16.msrb.mxu0 %v5883_v28  ;;  %v5925_v28 = vld [vmem:[%s7407_s1 + $0x460] sm:$0xff]  ;;  %v5973_v13 = vld [vmem:[%s7407_s1 + $0x5b0] sm:$0xff] }
  0x71   : > { %1472 = vmatpush.bf16.msrb.mxu1 %v5891_v29  ;;  %v1494_v29 = vld [vmem:[%s6300_s21 + $0x188] sm:$0xff] }
  0x72   : > { %1641 = vmatpush.bf16.msrb.mxu2 %v5901_v30  ;;  %v5935_v30 = vld [vmem:[%s7407_s1 + $0x4a0] sm:$0xff] }
  0x73   : > { %1659 = vmatpush.bf16.msrb.mxu3 %v5909_v31  ;;  %v5943_v31 = vld [vmem:[%s7407_s1 + $0x4e0] sm:$0xff] }
  0x74   : > { %1455 = vmatpush.bf16.msrb.mxu0 %v5882_v32  ;;  %v1347_v32 = vunpack.c.l.b16 %v1307_v26 }
  0x75   : > { %1473 = vmatpush.bf16.msrb.mxu1 %v5890_v33  ;;  %v1348_v33 = vunpack.c.h.b16 %v1307_v26  ;;  %v5953_v26 = vld [vmem:[%s7407_s1 + $0x520] sm:$0xff] }
  0x76   : > { %1642 = vmatpush.bf16.msrb.mxu2 %v5900_v34  ;;  %v1534_v34 = vunpack.c.l.b16 %v1494_v29 }
  0x77   : > { %1660 = vmatpush.bf16.msrb.mxu3 %v5908_v35  ;;  %v1535_v35 = vunpack.c.h.b16 %v1494_v29 }
  0x78   : > { %1456 = vmatpush.bf16.msrb.mxu0 %v5881_v37  ;;  %v5924_v37 = vld [vmem:[%s7407_s1 + $0x458] sm:$0xff]  ;;  %v1538_v42 = vpack.c.b16 %v1534_v34, %v1534_v34 }
  0x79   : > { %1474 = vmatpush.bf16.msrb.mxu1 %v5889_v38  ;;  %v5934_v38 = vld [vmem:[%s7407_s1 + $0x498] sm:$0xff]  ;;  %v1539_v43 = vpack.c.b16 %v1535_v35, %v1535_v35 }
  0x7a   : > { %1643 = vmatpush.bf16.msrb.mxu2 %v5899_v40  ;;  %v1351_v40 = vpack.c.b16 %v1347_v32, %v1347_v32 }
  0x7b   : > { %1661 = vmatpush.bf16.msrb.mxu3 %v5907_v41  ;;  %1092 = vmatmul.bf16.gmra.mxu0 %v977_v50  ;;  %v1352_v41 = vpack.c.b16 %v1348_v33, %v1348_v33  ;;  %v5932_v50 = vld [vmem:[%s7407_s1 + $0x488] sm:$0xff] }
  0x7c   : > { %1457 = vmatpush.bf16.msrb.mxu0 %v5880_v46  ;;  %1110 = vmatmul.bf16.gmra.mxu1 %v978_v51  ;;  %v5933_v46 = vld [vmem:[%s7407_s1 + $0x490] sm:$0xff]  ;;  %v5940_v51 = vld [vmem:[%s7407_s1 + $0x4c8] sm:$0xff] }
  0x7d   : > { %1475 = vmatpush.bf16.msrb.mxu1 %v5888_v47  ;;  %1279 = vmatmul.bf16.gmra.mxu2 %v1164_v52  ;;  %v5941_v47 = vld [vmem:[%s7407_s1 + $0x4d0] sm:$0xff]  ;;  %v5913_v52 = vld [vmem:[%s7407_s1 + $0x400] sm:$0xff] }
  0x7e   : > { %1644 = vmatpush.bf16.msrb.mxu2 %v5898_v48  ;;  %1297 = vmatmul.bf16.gmra.mxu3 %v1165_v53  ;;  %v5914_v48 = vld [vmem:[%s7407_s1 + $0x408] sm:$0xff]  ;;  %v5921_v53 = vld [vmem:[%s7407_s1 + $0x440] sm:$0xff] }
  0x7f   : > { %1662 = vmatpush.bf16.msrb.mxu3 %v5906_v49  ;;  %v5922_v49 = vld [vmem:[%s7407_s1 + $0x448] sm:$0xff] }
  0x80   : > { %1458 = vmatpush.bf16.msrb.mxu0 %v5879_v54  ;;  %v5931_v54 = vld [vmem:[%s7407_s1 + $0x480] sm:$0xff] }
  0x81   : > { %1476 = vmatpush.bf16.msrb.mxu1 %v5887_v55  ;;  %v5939_v55 = vld [vmem:[%s7407_s1 + $0x4c0] sm:$0xff] }
  0x82   : > { %1645 = vmatpush.bf16.msrb.mxu2 %v5897_v56  ;;  %v4839_v56 = vld [vmem:[%s6300_s21 + $0x40] sm:$0xf] }
  0x83   : > { %1663 = vmatpush.bf16.msrb.mxu3 %v5905_v57  ;;  %v5912_v57 = vld [vmem:[%s6300_s21 + $0xe4] sm:$0xf0] }
  0x84   : > { %1459 = vmatpush.bf16.msrb.mxu0 %v5878_v58  ;;  %v5911_v58 = vld [vmem:[%s6300_s21 + $0x44] sm:$0xf]  ;;  %v4840_v4 = vor.u32 %v5912_v57, %v4839_v56  ;;  %v5958_v56 = vld [vmem:[%s7407_s1 + $0x548] sm:$0xff] }
  0x85   : > { %1477 = vmatpush.bf16.msrb.mxu1 %v5886_v59  ;;  %v4841_v59 = vld [vmem:[%s6300_s21 + $0xe8] sm:$0xf0] }
  0x86   : > { %1646 = vmatpush.bf16.msrb.mxu2 %v5896_v60  ;;  %v5956_v60 = vld [vmem:[%s7407_s1 + $0x538] sm:$0xff]  ;;  %v4844_v5 = vor.u32 %v5911_v58, %v4841_v59  ;;  %v5968_v57 = vld [vmem:[%s7407_s1 + $0x588] sm:$0xff] }
  0x87   : > { %1664 = vmatpush.bf16.msrb.mxu3 %v5904_v61  ;;  %v5964_v61 = vld [vmem:[%s7407_s1 + $0x578] sm:$0xff]  ;;  %v5976_v58 = vld [vmem:[%s7407_s1 + $0x5c8] sm:$0xff] }
  0x88   : > { %1460 = vmatpush.bf16.msrb.mxu0 %v5877_v62  ;;  %v4911_v62 = vld [vmem:[%s6300_s21 + $0x48] sm:$0xf] }
  0x89   : > { %1478 = vmatpush.bf16.msrb.mxu1 %v5885_v63  ;;  %v5974_v63 = vld [vmem:[%s7407_s1 + $0x5b8] sm:$0xff] }
  0x8a   : > { %1647 = vmatpush.bf16.msrb.mxu2 %v5895_v0  ;;  %v5982_v0 = vld [vmem:[%s7407_s1 + $0x5f8] sm:$0xff] }
  0x8b   : > { %1665 = vmatpush.bf16.msrb.mxu3 %v5903_v1  ;;  %1461 = vmatmul.bf16.vlgmr.msrb.gmra.mxu0 %v4696_v14  ;;  %v5930_v1 = vld [vmem:[%s6300_s21 + $0xec] sm:$0xf0] }
  0x8c   : > { %1827 = vmatpush.bf16.msra.mxu0 %v5920_v6  ;;  %1479 = vmatmul.bf16.vlgmr.msrb.gmra.mxu1 %v4700_v15  ;;  %v4912_v8 = vor.u32 %v5930_v1, %v4911_v62  ;;  %v5981_v14 = vld [vmem:[%s7407_s1 + $0x5f0] sm:$0xff]  ;;  %v5954_v15 = vld [vmem:[%s7407_s1 + $0x528] sm:$0xff]  ;;  %v5957_v1 = vld [vmem:[%s7407_s1 + $0x540] sm:$0xff] }
  0x8d   : > { %1845 = vmatpush.bf16.msra.mxu1 %v5928_v7  ;;  %1648 = vmatmul.bf16.vlgmr.msrb.gmra.mxu2 %v4768_v16  ;;  %v5962_v16 = vld [vmem:[%s7407_s1 + $0x568] sm:$0xff] }
  0x8e   : > { %2014 = vmatpush.bf16.msra.mxu2 %v5938_v9  ;;  %1666 = vmatmul.bf16.vlgmr.msrb.gmra.mxu3 %v4772_v17  ;;  %v4916_v9 = vor.u32 %v5929_v2, %v4913_v3  ;;  %v5972_v17 = vld [vmem:[%s7407_s1 + $0x5a8] sm:$0xff]  ;;  %v5967_v2 = vld [vmem:[%s7407_s1 + $0x580] sm:$0xff] }
  0x8f   : > { %2032 = vmatpush.bf16.msra.mxu3 %v5946_v10  ;;  %v5975_v3 = vld [vmem:[%s7407_s1 + $0x5c0] sm:$0xff] }
  0x90   : > { %1828 = vmatpush.bf16.msra.mxu0 %v5919_v18  ;;  %v5980_v18 = vld [vmem:[%s7407_s1 + $0x5e8] sm:$0xff] }
  0x91   : > { %1846 = vmatpush.bf16.msra.mxu1 %v5927_v19 }
  0x92   : > { %2015 = vmatpush.bf16.msra.mxu2 %v5937_v20 }
  0x93   : > { %2033 = vmatpush.bf16.msra.mxu3 %v5945_v21 }
  0x94   : > { %1829 = vmatpush.bf16.msra.mxu0 %v5918_v22 }
  0x95   : > { %1847 = vmatpush.bf16.msra.mxu1 %v5926_v23 }
  0x96   : > { %2016 = vmatpush.bf16.msra.mxu2 %v5936_v24  ;;  %v1681_v24 = vld [vmem:[%s6300_s21 + $0x190] sm:$0xff] }
  0x97   : > { %2034 = vmatpush.bf16.msra.mxu3 %v5944_v25  ;;  %v1721_v32 = vunpack.c.l.b16 %v1681_v24  ;;  %v1722_v33 = vunpack.c.h.b16 %v1681_v24 }
  0x98   : > { %1830 = vmatpush.bf16.msra.mxu0 %v5917_v27  ;;  %v5961_v27 = vld [vmem:[%s7407_s1 + $0x560] sm:$0xff] }
  0x99   : > { %1848 = vmatpush.bf16.msra.mxu1 %v5925_v28  ;;  %v1868_v28 = vld [vmem:[%s6300_s21 + $0x198] sm:$0xff] }
  0x9a   : > { %2017 = vmatpush.bf16.msra.mxu2 %v5935_v30  ;;  %v5971_v30 = vld [vmem:[%s7407_s1 + $0x5a0] sm:$0xff]  ;;  %v1908_v34 = vunpack.c.l.b16 %v1868_v28  ;;  %v1909_v35 = vunpack.c.h.b16 %v1868_v28  ;;  %v6009_v28 = vld [vmem:[%s7407_s1 + $0x6b0] sm:$0xff] }
  0x9b   : > { %2035 = vmatpush.bf16.msra.mxu3 %v5943_v31  ;;  %1466 = vmatmul.bf16.gmra.mxu0 %v1351_v40  ;;  %v5979_v31 = vld [vmem:[%s7407_s1 + $0x5e0] sm:$0xff] }
  0x9c   : > { %1831 = vmatpush.bf16.msra.mxu0 %v5916_v36  ;;  %1484 = vmatmul.bf16.gmra.mxu1 %v1352_v41  ;;  %v5952_v36 = vld [vmem:[%s7407_s1 + $0x518] sm:$0xff] }
  0x9d   : > { %1849 = vmatpush.bf16.msra.mxu1 %v5924_v37  ;;  %1653 = vmatmul.bf16.gmra.mxu2 %v1538_v42  ;;  %v5960_v37 = vld [vmem:[%s7407_s1 + $0x558] sm:$0xff]  ;;  %v1725_v42 = vpack.c.b16 %v1721_v32, %v1721_v32  ;;  %v5990_v32 = vld [vmem:[%s7407_s1 + $0x628] sm:$0xff] }
  0x9e   : > { %2018 = vmatpush.bf16.msra.mxu2 %v5934_v38  ;;  %1671 = vmatmul.bf16.gmra.mxu3 %v1539_v43  ;;  %v5970_v38 = vld [vmem:[%s7407_s1 + $0x598] sm:$0xff]  ;;  %v1726_v43 = vpack.c.b16 %v1722_v33, %v1722_v33  ;;  %v5998_v33 = vld [vmem:[%s7407_s1 + $0x668] sm:$0xff] }
  0x9f   : > { %2036 = vmatpush.bf16.msra.mxu3 %v5942_v39  ;;  %v5978_v39 = vld [vmem:[%s7407_s1 + $0x5d8] sm:$0xff] }
  0xa0   : > { %1832 = vmatpush.bf16.msra.mxu0 %v5915_v44 }
  0xa1   : > { %1850 = vmatpush.bf16.msra.mxu1 %v5923_v45 }
  0xa2   : > { %2019 = vmatpush.bf16.msra.mxu2 %v5933_v46 }
  0xa3   : > { %2037 = vmatpush.bf16.msra.mxu3 %v5941_v47  ;;  %v1912_v47 = vpack.c.b16 %v1908_v34, %v1908_v34  ;;  %v6016_v34 = vld [vmem:[%s7407_s1 + $0x6e8] sm:$0xff] }
  0xa4   : > { %1833 = vmatpush.bf16.msra.mxu0 %v5914_v48  ;;  %v1913_v48 = vpack.c.b16 %v1909_v35, %v1909_v35 }
  0xa5   : > { %1851 = vmatpush.bf16.msra.mxu1 %v5922_v49 }
  0xa6   : > { %2020 = vmatpush.bf16.msra.mxu2 %v5932_v50  ;;  %v5951_v50 = vld [vmem:[%s7407_s1 + $0x510] sm:$0xff] }
  0xa7   : > { %2038 = vmatpush.bf16.msra.mxu3 %v5940_v51  ;;  %v5959_v51 = vld [vmem:[%s7407_s1 + $0x550] sm:$0xff] }
  0xa8   : > { %1834 = vmatpush.bf16.msra.mxu0 %v5913_v52  ;;  %v381_v6 = vpop.f32.mrf.mxu0 }
  0xa9   : > { %1852 = vmatpush.bf16.msra.mxu1 %v5921_v53  ;;  %v399_v7 = vpop.f32.mrf.mxu1  ;;  %v5969_v53 = vld [vmem:[%s7407_s1 + $0x590] sm:$0xff] }
  0xaa   : > { %2021 = vmatpush.bf16.msra.mxu2 %v5931_v54  ;;  %v400_v10 = vadd.f32 %v399_v7, %v381_v6  ;;  %v5977_v54 = vld [vmem:[%s7407_s1 + $0x5d0] sm:$0xff]  ;;  %v5948_v6 = vld [vmem:[%s6300_s21 + $0xf4] sm:$0xf0] }
  0xab   : > { %2039 = vmatpush.bf16.msra.mxu3 %v5939_v55  ;;  %1835 = vmatmul.bf16.vlgmr.msra.gmra.mxu0 %v4840_v4  ;;  %v5950_v55 = vld [vmem:[%s7407_s1 + $0x508] sm:$0xff]  ;;  %v5947_v7 = vld [vmem:[%s6300_s21 + $0x54] sm:$0xf] }
  0xac   : > { %2201 = vmatpush.bf16.msrb.mxu0 %v5956_v60  ;;  %1853 = vmatmul.bf16.vlgmr.msra.gmra.mxu1 %v4844_v5  ;;  %v4983_v5 = vld [vmem:[%s6300_s21 + $0x50] sm:$0xf] }
  0xad   : > { %2219 = vmatpush.bf16.msrb.mxu1 %v5964_v61  ;;  %2022 = vmatmul.bf16.vlgmr.msra.gmra.mxu2 %v4912_v8  ;;  %v4985_v8 = vld [vmem:[%s6300_s21 + $0xf8] sm:$0xf0] }
  0xae   : > { %2388 = vmatpush.bf16.msrb.mxu2 %v5974_v63  ;;  %2040 = vmatmul.bf16.vlgmr.msra.gmra.mxu3 %v4916_v9  ;;  %v5992_v9 = vld [vmem:[%s7407_s1 + $0x638] sm:$0xff] }
  0xaf   : > { %2406 = vmatpush.bf16.msrb.mxu3 %v5982_v0  ;;  %v5949_v0 = vld [vmem:[%s7407_s1 + $0x500] sm:$0xff] }
  0xb0   : > { %2202 = vmatpush.bf16.msrb.mxu0 %v5955_v11  ;;  %v530_v19 = vpop.f32.mrf.mxu2  ;;  %v383_v22 = vpop.f32.mrf.mxu0  ;;  %v5055_v11 = vld [vmem:[%s6300_s21 + $0x58] sm:$0xf] }
  0xb1   : > { %2220 = vmatpush.bf16.msrb.mxu1 %v5963_v12  ;;  %v548_v20 = vpop.f32.mrf.mxu3  ;;  %v531_v21 = vadd.f32 %v530_v19, %v400_v10  ;;  %v401_v23 = vpop.f32.mrf.mxu1  ;;  %v6000_v10 = vld [vmem:[%s7407_s1 + $0x678] sm:$0xff]  ;;  %v4984_v19 = vor.u32 %v5948_v6, %v4983_v5  ;;  %v5995_v5 = vld [vmem:[%s7407_s1 + $0x650] sm:$0xff] }
  0xb2   : > { %2389 = vmatpush.bf16.msrb.mxu2 %v5973_v13  ;;  %v402_v25 = vadd.f32 %v401_v23, %v383_v22  ;;  %v6010_v12 = vld [vmem:[%s7407_s1 + $0x6b8] sm:$0xff] }
  0xb3   : > { %2407 = vmatpush.bf16.msrb.mxu3 %v5981_v14  ;;  %v6796_v29 = vadd.f32 %v548_v20, %v531_v21  ;;  %v6018_v13 = vld [vmem:[%s7407_s1 + $0x6f8] sm:$0xff]  ;;  %v5966_v14 = vld [vmem:[%s6300_s21 + $0xfc] sm:$0xf0]  ;;  %v4988_v20 = vor.u32 %v5947_v7, %v4985_v8  ;;  %v6005_v7 = vld [vmem:[%s7407_s1 + $0x690] sm:$0xff] }
  0xb4   : > { %2203 = vmatpush.bf16.msrb.mxu0 %v5954_v15  ;;  %v5965_v15 = vld [vmem:[%s6300_s21 + $0x5c] sm:$0xf]  ;;  %v5056_v23 = vor.u32 %v5966_v14, %v5055_v11  ;;  %v6013_v8 = vld [vmem:[%s7407_s1 + $0x6d0] sm:$0xff]  ;;  %v5994_v11 = vld [vmem:[%s7407_s1 + $0x648] sm:$0xff] }
  0xb5   : > { %2221 = vmatpush.bf16.msrb.mxu1 %v5962_v16  ;;  %v5057_v16 = vld [vmem:[%s6300_s21 + $0x100] sm:$0xf0] }
  0xb6   : > { %2390 = vmatpush.bf16.msrb.mxu2 %v5972_v17  ;;  %v5060_v24 = vor.u32 %v5965_v15, %v5057_v16 }
  0xb7   : > { %2408 = vmatpush.bf16.msrb.mxu3 %v5980_v18 }
  0xb8   : > { %2204 = vmatpush.bf16.msrb.mxu0 %v5953_v26  ;;  %v532_v40 = vpop.f32.mrf.mxu2  ;;  %v386_v45 = vpop.f32.mrf.mxu0  ;;  %v5991_v26 = vld [vmem:[%s7407_s1 + $0x630] sm:$0xff] }
  0xb9   : > { %2222 = vmatpush.bf16.msrb.mxu1 %v5961_v27  ;;  %v550_v41 = vpop.f32.mrf.mxu3  ;;  %v533_v44 = vadd.f32 %v532_v40, %v402_v25  ;;  %v404_v46 = vpop.f32.mrf.mxu1  ;;  %v5999_v27 = vld [vmem:[%s7407_s1 + $0x670] sm:$0xff]  ;;  %v2055_v40 = vld [vmem:[%s6300_s21 + $0x1a0] sm:$0xff] }
  0xba   : > { %2391 = vmatpush.bf16.msrb.mxu2 %v5971_v30  ;;  %v405_v49 = vadd.f32 %v404_v46, %v386_v45  ;;  %v6017_v30 = vld [vmem:[%s7407_s1 + $0x6f0] sm:$0xff]  ;;  %v6007_v46 = vld [vmem:[%s7407_s1 + $0x6a0] sm:$0xff] }
  0xbb   : > { %2409 = vmatpush.bf16.msrb.mxu3 %v5979_v31  ;;  %v6822_v52 = vadd.f32 %v550_v41, %v533_v44  ;;  %1840 = vmatmul.bf16.gmra.mxu0 %v1725_v42  ;;  %v5989_v42 = vld [vmem:[%s7407_s1 + $0x620] sm:$0xff]  ;;  %v2242_v44 = vld [vmem:[%s6300_s21 + $0x1a8] sm:$0xff] }
  0xbc   : > { %2205 = vmatpush.bf16.msrb.mxu0 %v5952_v36  ;;  %1858 = vmatmul.bf16.gmra.mxu1 %v1726_v43  ;;  %v5997_v43 = vld [vmem:[%s7407_s1 + $0x660] sm:$0xff] }
  0xbd   : > { %2223 = vmatpush.bf16.msrb.mxu1 %v5960_v37  ;;  %2027 = vmatmul.bf16.gmra.mxu2 %v1912_v47  ;;  %v6015_v47 = vld [vmem:[%s7407_s1 + $0x6e0] sm:$0xff] }
  0xbe   : > { %2392 = vmatpush.bf16.msrb.mxu2 %v5970_v38  ;;  %2045 = vmatmul.bf16.gmra.mxu3 %v1913_v48 }
  0xbf   : > { %2410 = vmatpush.bf16.msrb.mxu3 %v5978_v39 }
  0xc0   : > { %2206 = vmatpush.bf16.msrb.mxu0 %v5951_v50  ;;  %v535_v59 = vpop.f32.mrf.mxu2  ;;  %v388_v62 = vpop.f32.mrf.mxu0  ;;  %v2096_v50 = vunpack.c.h.b16 %v2055_v40 }
  0xc1   : > { %2224 = vmatpush.bf16.msrb.mxu1 %v5959_v51  ;;  %v553_v60 = vpop.f32.mrf.mxu3  ;;  %v536_v61 = vadd.f32 %v535_v59, %v405_v49  ;;  %v406_v63 = vpop.f32.mrf.mxu1  ;;  %v2095_v49 = vunpack.c.l.b16 %v2055_v40  ;;  %v2282_v51 = vunpack.c.l.b16 %v2242_v44 }
  0xc2   : > { %2393 = vmatpush.bf16.msrb.mxu2 %v5969_v53  ;;  %v2283_v53 = vunpack.c.h.b16 %v2242_v44  ;;  %v6027_v44 = vld [vmem:[%s7407_s1 + $0x730] sm:$0xff] }
  0xc3   : > { %2411 = vmatpush.bf16.msrb.mxu3 %v5977_v54  ;;  %v6854_v4 = vadd.f32 %v553_v60, %v536_v61  ;;  %v5988_v54 = vld [vmem:[%s7407_s1 + $0x618] sm:$0xff]  ;;  %v2099_v59 = vpack.c.b16 %v2095_v49, %v2095_v49  ;;  %v2100_v60 = vpack.c.b16 %v2096_v50, %v2096_v50  ;;  %v6026_v50 = vld [vmem:[%s7407_s1 + $0x728] sm:$0xff] }
  0xc4   : > { %2207 = vmatpush.bf16.msrb.mxu0 %v5950_v55  ;;  %v5996_v55 = vld [vmem:[%s7407_s1 + $0x658] sm:$0xff] }
  0xc5   : > { %2225 = vmatpush.bf16.msrb.mxu1 %v5958_v56  ;;  %v6014_v56 = vld [vmem:[%s7407_s1 + $0x6d8] sm:$0xff] }
  0xc6   : > { %2394 = vmatpush.bf16.msrb.mxu2 %v5968_v57 }
  0xc7   : > { %2412 = vmatpush.bf16.msrb.mxu3 %v5976_v58 }
  0xc8   : > { %2208 = vmatpush.bf16.msrb.mxu0 %v5949_v0  ;;  %v537_v17 = vpop.f32.mrf.mxu2  ;;  %v714_v21 = vpop.f32.mrf.mxu0  ;;  %v2286_v0 = vpack.c.b16 %v2282_v51, %v2282_v51  ;;  %v6034_v51 = vld [vmem:[%s7407_s1 + $0x768] sm:$0xff] }
  0xc9   : > { %2226 = vmatpush.bf16.msrb.mxu1 %v5957_v1  ;;  %v555_v18 = vpop.f32.mrf.mxu3  ;;  %v732_v22 = vpop.f32.mrf.mxu1  ;;  %v2287_v1 = vpack.c.b16 %v2283_v53, %v2283_v53  ;;  %v6052_v53 = vld [vmem:[%s7407_s1 + $0x7e8] sm:$0xff] }
  0xca   : > { %2395 = vmatpush.bf16.msrb.mxu2 %v5967_v2  ;;  %v733_v25 = vadd.f32 %v732_v22, %v714_v21  ;;  %v5985_v18 = vld [vmem:[%s7407_s1 + $0x600] sm:$0xff] }
  0xcb   : > { %2413 = vmatpush.bf16.msrb.mxu3 %v5975_v3  ;;  %2209 = vmatmul.bf16.vlgmr.msrb.gmra.mxu0 %v4984_v19  ;;  %v5987_v3 = vld [vmem:[%s7407_s1 + $0x610] sm:$0xff]  ;;  %v5993_v19 = vld [vmem:[%s7407_s1 + $0x640] sm:$0xff] }
  0xcc   : > { %2575 = vmatpush.bf16.msra.mxu0 %v5992_v9  ;;  %v741_v31 = vadd.f32 %v733_v25, %v6796_v29  ;;  %2227 = vmatmul.bf16.vlgmr.msrb.gmra.mxu1 %v4988_v20  ;;  %v6008_v29 = vld [vmem:[%s7407_s1 + $0x6a8] sm:$0xff]  ;;  %v6003_v20 = vld [vmem:[%s7407_s1 + $0x680] sm:$0xff] }
  0xcd   : > { %2593 = vmatpush.bf16.msra.mxu1 %v6000_v10  ;;  %2396 = vmatmul.bf16.vlgmr.msrb.gmra.mxu2 %v5056_v23  ;;  %v5986_v10 = vld [vmem:[%s7407_s1 + $0x608] sm:$0xff]  ;;  %v6011_v21 = vld [vmem:[%s7407_s1 + $0x6c0] sm:$0xff] }
  0xce   : > { %2762 = vmatpush.bf16.msra.mxu2 %v6010_v12  ;;  %2414 = vmatmul.bf16.vlgmr.msrb.gmra.mxu3 %v5060_v24  ;;  %v6012_v12 = vld [vmem:[%s7407_s1 + $0x6c8] sm:$0xff]  ;;  %v5127_v23 = vld [vmem:[%s6300_s21 + $0x60] sm:$0xf]  ;;  %v5983_v25 = vld [vmem:[%s6300_s21 + $0x64] sm:$0xf] }
  0xcf   : > { %2780 = vmatpush.bf16.msra.mxu3 %v6018_v13  ;;  %v5984_v24 = vld [vmem:[%s6300_s21 + $0x104] sm:$0xf0] }
  0xd0   : > { %2576 = vmatpush.bf16.msra.mxu0 %v5991_v26  ;;  %v901_v35 = vpop.f32.mrf.mxu2  ;;  %v716_v38 = vpop.f32.mrf.mxu0  ;;  %v5129_v26 = vld [vmem:[%s6300_s21 + $0x108] sm:$0xf0] }
  0xd1   : > { %2594 = vmatpush.bf16.msra.mxu1 %v5999_v27  ;;  %v919_v36 = vpop.f32.mrf.mxu3  ;;  %v734_v39 = vpop.f32.mrf.mxu1  ;;  %v6028_v27 = vld [vmem:[%s7407_s1 + $0x738] sm:$0xff] }
  0xd2   : > { %2763 = vmatpush.bf16.msra.mxu2 %v6009_v28  ;;  %v920_v37 = vadd.f32 %v919_v36, %v901_v35  ;;  %v735_v41 = vadd.f32 %v734_v39, %v716_v38  ;;  %v6036_v28 = vld [vmem:[%s7407_s1 + $0x778] sm:$0xff]  ;;  %v5132_v38 = vor.u32 %v5983_v25, %v5129_v26  ;;  %v6041_v25 = vld [vmem:[%s7407_s1 + $0x790] sm:$0xff] }
  0xd3   : > { %2781 = vmatpush.bf16.msra.mxu3 %v6017_v30  ;;  %v5199_v30 = vld [vmem:[%s6300_s21 + $0x68] sm:$0xf]  ;;  %v6049_v26 = vld [vmem:[%s7407_s1 + $0x7d0] sm:$0xff] }
  0xd4   : > { %2577 = vmatpush.bf16.msra.mxu0 %v5990_v32  ;;  %v6909_v45 = vadd.f32 %v920_v37, %v741_v31  ;;  %v742_v48 = vadd.f32 %v735_v41, %v6822_v52  ;;  %v6006_v52 = vld [vmem:[%s7407_s1 + $0x698] sm:$0xff]  ;;  %v5128_v37 = vor.u32 %v5984_v24, %v5127_v23  ;;  %v6031_v23 = vld [vmem:[%s7407_s1 + $0x750] sm:$0xff] }
  0xd5   : > { %2595 = vmatpush.bf16.msra.mxu1 %v5998_v33  ;;  %v6046_v31 = vld [vmem:[%s7407_s1 + $0x7b8] sm:$0xff]  ;;  %v6002_v33 = vld [vmem:[%s6300_s21 + $0x10c] sm:$0xf0] }
  0xd6   : > { %2764 = vmatpush.bf16.msra.mxu2 %v6008_v29  ;;  %v6054_v32 = vld [vmem:[%s7407_s1 + $0x7f8] sm:$0xff]  ;;  %v6001_v29 = vld [vmem:[%s6300_s21 + $0x6c] sm:$0xf]  ;;  %v5200_v41 = vor.u32 %v6002_v33, %v5199_v30 }
  0xd7   : > { %2782 = vmatpush.bf16.msra.mxu3 %v6016_v34  ;;  %v5201_v34 = vld [vmem:[%s6300_s21 + $0x110] sm:$0xf0]  ;;  %v6030_v30 = vld [vmem:[%s7407_s1 + $0x748] sm:$0xff] }
  0xd8   : > { %2578 = vmatpush.bf16.msra.mxu0 %v5989_v42  ;;  %v903_v57 = vpop.f32.mrf.mxu2  ;;  %v719_v62 = vpop.f32.mrf.mxu0  ;;  %v5204_v42 = vor.u32 %v6001_v29, %v5201_v34 }
  0xd9   : > { %2596 = vmatpush.bf16.msra.mxu1 %v5997_v43  ;;  %v921_v58 = vpop.f32.mrf.mxu3  ;;  %v737_v63 = vpop.f32.mrf.mxu1 }
  0xda   : > { %2765 = vmatpush.bf16.msra.mxu2 %v6007_v46  ;;  %v922_v61 = vadd.f32 %v921_v58, %v903_v57  ;;  %v738_v2 = vadd.f32 %v737_v63, %v719_v62  ;;  %v6035_v46 = vld [vmem:[%s7407_s1 + $0x770] sm:$0xff]  ;;  %v2616_v62 = vld [vmem:[%s6300_s21 + $0x1b8] sm:$0xff] }
  0xdb   : > { %2783 = vmatpush.bf16.msra.mxu3 %v6015_v47  ;;  %2214 = vmatmul.bf16.gmra.mxu0 %v2099_v59  ;;  %v6045_v47 = vld [vmem:[%s7407_s1 + $0x7b0] sm:$0xff] }
  0xdc   : > { %2579 = vmatpush.bf16.msra.mxu0 %v5988_v54  ;;  %v6936_v6 = vadd.f32 %v922_v61, %v742_v48  ;;  %v743_v9 = vadd.f32 %v738_v2, %v6854_v4  ;;  %2232 = vmatmul.bf16.gmra.mxu1 %v2100_v60  ;;  %v6004_v4 = vld [vmem:[%s7407_s1 + $0x688] sm:$0xff]  ;;  %v6053_v48 = vld [vmem:[%s7407_s1 + $0x7f0] sm:$0xff]  ;;  %v6025_v60 = vld [vmem:[%s7407_s1 + $0x720] sm:$0xff] }
  0xdd   : > { %2597 = vmatpush.bf16.msra.mxu1 %v5996_v55  ;;  %2401 = vmatmul.bf16.gmra.mxu2 %v2286_v0  ;;  %v2429_v58 = vld [vmem:[%s6300_s21 + $0x1b0] sm:$0xff]  ;;  %v6033_v61 = vld [vmem:[%s7407_s1 + $0x760] sm:$0xff] }
  0xde   : > { %2766 = vmatpush.bf16.msra.mxu2 %v6006_v52  ;;  %2419 = vmatmul.bf16.gmra.mxu3 %v2287_v1  ;;  %v6043_v0 = vld [vmem:[%s7407_s1 + $0x7a0] sm:$0xff] }
  0xdf   : > { %2784 = vmatpush.bf16.msra.mxu3 %v6014_v56  ;;  %v6051_v1 = vld [vmem:[%s7407_s1 + $0x7e0] sm:$0xff] }
  0xe0   : > { %2580 = vmatpush.bf16.msra.mxu0 %v5987_v3  ;;  %v906_v13 = vpop.f32.mrf.mxu2  ;;  %v721_v16 = vpop.f32.mrf.mxu0  ;;  %v2469_v3 = vunpack.c.l.b16 %v2429_v58 }
  0xe1   : > { %2598 = vmatpush.bf16.msra.mxu1 %v5995_v5  ;;  %v924_v14 = vpop.f32.mrf.mxu3  ;;  %v739_v17 = vpop.f32.mrf.mxu1  ;;  %v2470_v5 = vunpack.c.h.b16 %v2429_v58 }
  0xe2   : > { %2767 = vmatpush.bf16.msra.mxu2 %v6005_v7  ;;  %v925_v15 = vadd.f32 %v924_v14, %v906_v13  ;;  %v2656_v7 = vunpack.c.l.b16 %v2616_v62  ;;  %v2473_v13 = vpack.c.b16 %v2469_v3, %v2469_v3 }
  0xe3   : > { %2785 = vmatpush.bf16.msra.mxu3 %v6013_v8  ;;  %v2657_v8 = vunpack.c.h.b16 %v2616_v62  ;;  %v2474_v14 = vpack.c.b16 %v2470_v5, %v2470_v5  ;;  %v6063_v62 = vld [vmem:[%s7407_s1 + $0x830] sm:$0xff]  ;;  %v6062_v5 = vld [vmem:[%s7407_s1 + $0x828] sm:$0xff] }
  0xe4   : > { %2581 = vmatpush.bf16.msra.mxu0 %v5986_v10  ;;  %v6969_v22 = vadd.f32 %v925_v15, %v743_v9  ;;  %v6024_v9 = vld [vmem:[%s7407_s1 + $0x718] sm:$0xff] }
  0xe5   : > { %2599 = vmatpush.bf16.msra.mxu1 %v5994_v11  ;;  %v6032_v10 = vld [vmem:[%s7407_s1 + $0x758] sm:$0xff] }
  0xe6   : > { %2768 = vmatpush.bf16.msra.mxu2 %v6004_v4  ;;  %v6050_v11 = vld [vmem:[%s7407_s1 + $0x7d8] sm:$0xff] }
  0xe7   : > { %2786 = vmatpush.bf16.msra.mxu3 %v6012_v12 }
  0xe8   : > { %2582 = vmatpush.bf16.msra.mxu0 %v5985_v18  ;;  %v908_v35 = vpop.f32.mrf.mxu2  ;;  %v1088_v39 = vpop.f32.mrf.mxu0  ;;  %v2660_v18 = vpack.c.b16 %v2656_v7, %v2656_v7  ;;  %v6070_v7 = vld [vmem:[%s7407_s1 + $0x868] sm:$0xff] }
  0xe9   : > { %2600 = vmatpush.bf16.msra.mxu1 %v5993_v19  ;;  %v926_v36 = vpop.f32.mrf.mxu3  ;;  %v1106_v40 = vpop.f32.mrf.mxu1  ;;  %v2661_v19 = vpack.c.b16 %v2657_v8, %v2657_v8  ;;  %v6088_v8 = vld [vmem:[%s7407_s1 + $0x8e8] sm:$0xff] }
  0xea   : > { %2769 = vmatpush.bf16.msra.mxu2 %v6003_v20  ;;  %v1107_v43 = vadd.f32 %v1106_v40, %v1088_v39  ;;  %v6021_v36 = vld [vmem:[%s7407_s1 + $0x700] sm:$0xff] }
  0xeb   : > { %2787 = vmatpush.bf16.msra.mxu3 %v6011_v21  ;;  %2583 = vmatmul.bf16.vlgmr.msra.gmra.mxu0 %v5128_v37  ;;  %v6023_v21 = vld [vmem:[%s7407_s1 + $0x710] sm:$0xff]  ;;  %v6029_v37 = vld [vmem:[%s7407_s1 + $0x740] sm:$0xff] }
  0xec   : > { %2949 = vmatpush.bf16.msrb.mxu0 %v6028_v27  ;;  %v1115_v49 = vadd.f32 %v1107_v43, %v6909_v45  ;;  %2601 = vmatmul.bf16.vlgmr.msra.gmra.mxu1 %v5132_v38  ;;  %v6044_v45 = vld [vmem:[%s7407_s1 + $0x7a8] sm:$0xff]  ;;  %v6039_v38 = vld [vmem:[%s7407_s1 + $0x780] sm:$0xff]  ;;  %v6019_v43 = vld [vmem:[%s6300_s21 + $0x74] sm:$0xf] }
  0xed   : > { %2967 = vmatpush.bf16.msrb.mxu1 %v6036_v28  ;;  %2770 = vmatmul.bf16.vlgmr.msra.gmra.mxu2 %v5200_v41  ;;  %v6022_v28 = vld [vmem:[%s7407_s1 + $0x708] sm:$0xff]  ;;  %v6047_v39 = vld [vmem:[%s7407_s1 + $0x7c0] sm:$0xff]  ;;  %v5271_v41 = vld [vmem:[%s6300_s21 + $0x70] sm:$0xf] }
  0xee   : > { %3136 = vmatpush.bf16.msrb.mxu2 %v6046_v31  ;;  %2788 = vmatmul.bf16.vlgmr.msra.gmra.mxu3 %v5204_v42  ;;  %v6048_v31 = vld [vmem:[%s7407_s1 + $0x7c8] sm:$0xff]  ;;  %v6020_v42 = vld [vmem:[%s6300_s21 + $0x114] sm:$0xf0] }
  0xef   : > { %3154 = vmatpush.bf16.msrb.mxu3 %v6054_v32 }
  0xf0   : > { %2950 = vmatpush.bf16.msrb.mxu0 %v6027_v44  ;;  %v1275_v54 = vpop.f32.mrf.mxu2  ;;  %v1090_v56 = vpop.f32.mrf.mxu0  ;;  %v5273_v44 = vld [vmem:[%s6300_s21 + $0x118] sm:$0xf0] }
  0xf1   : > { %2968 = vmatpush.bf16.msrb.mxu1 %v6035_v46  ;;  %v1293_v55 = vpop.f32.mrf.mxu3  ;;  %v1108_v57 = vpop.f32.mrf.mxu1  ;;  %v6064_v46 = vld [vmem:[%s7407_s1 + $0x838] sm:$0xff] }
  0xf2   : > { %3137 = vmatpush.bf16.msrb.mxu2 %v6045_v47  ;;  %v1294_v52 = vadd.f32 %v1293_v55, %v1275_v54  ;;  %v1109_v59 = vadd.f32 %v1108_v57, %v1090_v56  ;;  %v6072_v47 = vld [vmem:[%s7407_s1 + $0x878] sm:$0xff]  ;;  %v5276_v56 = vor.u32 %v6019_v43, %v5273_v44  ;;  %v6077_v43 = vld [vmem:[%s7407_s1 + $0x890] sm:$0xff] }
  0xf3   : > { %3155 = vmatpush.bf16.msrb.mxu3 %v6053_v48  ;;  %v5343_v48 = vld [vmem:[%s6300_s21 + $0x78] sm:$0xf]  ;;  %v6085_v44 = vld [vmem:[%s7407_s1 + $0x8d0] sm:$0xff] }
  0xf4   : > { %2951 = vmatpush.bf16.msrb.mxu0 %v6026_v50  ;;  %v7024_v63 = vadd.f32 %v1294_v52, %v1115_v49  ;;  %v1116_v2 = vadd.f32 %v1109_v59, %v6936_v6  ;;  %v6042_v6 = vld [vmem:[%s7407_s1 + $0x798] sm:$0xff]  ;;  %v5272_v52 = vor.u32 %v6020_v42, %v5271_v41  ;;  %v6067_v41 = vld [vmem:[%s7407_s1 + $0x850] sm:$0xff] }
  0xf5   : > { %2969 = vmatpush.bf16.msrb.mxu1 %v6034_v51  ;;  %v6082_v49 = vld [vmem:[%s7407_s1 + $0x8b8] sm:$0xff]  ;;  %v6038_v51 = vld [vmem:[%s6300_s21 + $0x11c] sm:$0xf0] }
  0xf6   : > { %3138 = vmatpush.bf16.msrb.mxu2 %v6044_v45  ;;  %v6090_v50 = vld [vmem:[%s7407_s1 + $0x8f8] sm:$0xff]  ;;  %v5344_v59 = vor.u32 %v6038_v51, %v5343_v48  ;;  %v6066_v48 = vld [vmem:[%s7407_s1 + $0x848] sm:$0xff] }
  0xf7   : > { %3156 = vmatpush.bf16.msrb.mxu3 %v6052_v53  ;;  %v6037_v45 = vld [vmem:[%s6300_s21 + $0x7c] sm:$0xf]  ;;  %v5345_v53 = vld [vmem:[%s6300_s21 + $0x120] sm:$0xf0] }
  0xf8   : > { %2952 = vmatpush.bf16.msrb.mxu0 %v6025_v60  ;;  %v1277_v4 = vpop.f32.mrf.mxu2  ;;  %v1093_v16 = vpop.f32.mrf.mxu0  ;;  %v5348_v60 = vor.u32 %v6037_v45, %v5345_v53 }
  0xf9   : > { %2970 = vmatpush.bf16.msrb.mxu1 %v6033_v61  ;;  %v1295_v12 = vpop.f32.mrf.mxu3  ;;  %v1111_v17 = vpop.f32.mrf.mxu1 }
  0xfa   : > { %3139 = vmatpush.bf16.msrb.mxu2 %v6043_v0  ;;  %v1296_v15 = vadd.f32 %v1295_v12, %v1277_v4  ;;  %v1112_v20 = vadd.f32 %v1111_v17, %v1093_v16  ;;  %v6071_v0 = vld [vmem:[%s7407_s1 + $0x870] sm:$0xff]  ;;  %v2803_v12 = vld [vmem:[%s6300_s21 + $0x1c0] sm:$0xff]  ;;  %v2990_v16 = vld [vmem:[%s6300_s21 + $0x1c8] sm:$0xff] }
  0xfb   : > { %3157 = vmatpush.bf16.msrb.mxu3 %v6051_v1  ;;  %2588 = vmatmul.bf16.gmra.mxu0 %v2473_v13  ;;  %v6081_v1 = vld [vmem:[%s7407_s1 + $0x8b0] sm:$0xff] }
  0xfc   : > { %2953 = vmatpush.bf16.msrb.mxu0 %v6024_v9  ;;  %v7051_v24 = vadd.f32 %v1296_v15, %v1116_v2  ;;  %v1117_v27 = vadd.f32 %v1112_v20, %v6969_v22  ;;  %2606 = vmatmul.bf16.gmra.mxu1 %v2474_v14  ;;  %v6040_v22 = vld [vmem:[%s7407_s1 + $0x788] sm:$0xff]  ;;  %v6089_v2 = vld [vmem:[%s7407_s1 + $0x8f0] sm:$0xff]  ;;  %v6061_v14 = vld [vmem:[%s7407_s1 + $0x820] sm:$0xff] }
  0xfd   : > { %2971 = vmatpush.bf16.msrb.mxu1 %v6032_v10  ;;  %2775 = vmatmul.bf16.gmra.mxu2 %v2660_v18  ;;  %v6069_v15 = vld [vmem:[%s7407_s1 + $0x860] sm:$0xff] }
  0xfe   : > { %3140 = vmatpush.bf16.msrb.mxu2 %v6042_v6  ;;  %2793 = vmatmul.bf16.gmra.mxu3 %v2661_v19  ;;  %v6079_v18 = vld [vmem:[%s7407_s1 + $0x8a0] sm:$0xff] }
  0xff   : > { %3158 = vmatpush.bf16.msrb.mxu3 %v6050_v11  ;;  %v6087_v19 = vld [vmem:[%s7407_s1 + $0x8e0] sm:$0xff] }
 0x100   : > { %2954 = vmatpush.bf16.msrb.mxu0 %v6023_v21  ;;  %v1280_v32 = vpop.f32.mrf.mxu2  ;;  %v1095_v34 = vpop.f32.mrf.mxu0  ;;  %v2843_v21 = vunpack.c.l.b16 %v2803_v12 }
 0x101   : > { %2972 = vmatpush.bf16.msrb.mxu1 %v6031_v23  ;;  %v1298_v33 = vpop.f32.mrf.mxu3  ;;  %v1113_v35 = vpop.f32.mrf.mxu1  ;;  %v2844_v23 = vunpack.c.h.b16 %v2803_v12 }
 0x102   : > { %3141 = vmatpush.bf16.msrb.mxu2 %v6041_v25  ;;  %v1299_v29 = vadd.f32 %v1298_v33, %v1280_v32  ;;  %v3030_v25 = vunpack.c.l.b16 %v2990_v16  ;;  %v2847_v32 = vpack.c.b16 %v2843_v21, %v2843_v21 }
 0x103   : > { %3159 = vmatpush.bf16.msrb.mxu3 %v6049_v26  ;;  %v3031_v26 = vunpack.c.h.b16 %v2990_v16  ;;  %v2848_v33 = vpack.c.b16 %v2844_v23, %v2844_v23  ;;  %v6099_v16 = vld [vmem:[%s7407_s1 + $0x930] sm:$0xff]  ;;  %v6098_v23 = vld [vmem:[%s7407_s1 + $0x928] sm:$0xff] }
 0x104   : > { %2955 = vmatpush.bf16.msrb.mxu0 %v6022_v28  ;;  %v7084_v40 = vadd.f32 %v1299_v29, %v1117_v27  ;;  %v6060_v27 = vld [vmem:[%s7407_s1 + $0x818] sm:$0xff] }
 0x105   : > { %2973 = vmatpush.bf16.msrb.mxu1 %v6030_v30  ;;  %v6068_v28 = vld [vmem:[%s7407_s1 + $0x858] sm:$0xff] }
 0x106   : > { %3142 = vmatpush.bf16.msrb.mxu2 %v6040_v22  ;;  %v6086_v30 = vld [vmem:[%s7407_s1 + $0x8d8] sm:$0xff] }
 0x107   : > { %3160 = vmatpush.bf16.msrb.mxu3 %v6048_v31 }
 0x108   : > { %2956 = vmatpush.bf16.msrb.mxu0 %v6021_v36  ;;  %v1282_v54 = vpop.f32.mrf.mxu2  ;;  %v1462_v57 = vpop.f32.mrf.mxu0  ;;  %v3034_v36 = vpack.c.b16 %v3030_v25, %v3030_v25  ;;  %v6106_v25 = vld [vmem:[%s7407_s1 + $0x968] sm:$0xff] }
 0x109   : > { %2974 = vmatpush.bf16.msrb.mxu1 %v6029_v37  ;;  %v1300_v55 = vpop.f32.mrf.mxu3  ;;  %v1480_v58 = vpop.f32.mrf.mxu1  ;;  %v3035_v37 = vpack.c.b16 %v3031_v26, %v3031_v26  ;;  %v6124_v26 = vld [vmem:[%s7407_s1 + $0x9e8] sm:$0xff] }
 0x10a   : > { %3143 = vmatpush.bf16.msrb.mxu2 %v6039_v38  ;;  %v1481_v61 = vadd.f32 %v1480_v58, %v1462_v57  ;;  %v6057_v55 = vld [vmem:[%s7407_s1 + $0x800] sm:$0xff] }
 0x10b   : > { %3161 = vmatpush.bf16.msrb.mxu3 %v6047_v39  ;;  %2957 = vmatmul.bf16.vlgmr.msrb.gmra.mxu0 %v5272_v52  ;;  %v6059_v39 = vld [vmem:[%s7407_s1 + $0x810] sm:$0xff]  ;;  %v6065_v52 = vld [vmem:[%s7407_s1 + $0x840] sm:$0xff] }
 0x10c   : > { %3323 = vmatpush.bf16.msra.mxu0 %v6064_v46  ;;  %v1489_v3 = vadd.f32 %v1481_v61, %v7024_v63  ;;  %2975 = vmatmul.bf16.vlgmr.msrb.gmra.mxu1 %v5276_v56  ;;  %v6080_v63 = vld [vmem:[%s7407_s1 + $0x8a8] sm:$0xff]  ;;  %v6075_v56 = vld [vmem:[%s7407_s1 + $0x880] sm:$0xff] }
 0x10d   : > { %3341 = vmatpush.bf16.msra.mxu1 %v6072_v47  ;;  %3144 = vmatmul.bf16.vlgmr.msrb.gmra.mxu2 %v5344_v59  ;;  %v6058_v47 = vld [vmem:[%s7407_s1 + $0x808] sm:$0xff]  ;;  %v6083_v57 = vld [vmem:[%s7407_s1 + $0x8c0] sm:$0xff] }
 0x10e   : > { %3510 = vmatpush.bf16.msra.mxu2 %v6082_v49  ;;  %3162 = vmatmul.bf16.vlgmr.msrb.gmra.mxu3 %v5348_v60  ;;  %v6084_v49 = vld [vmem:[%s7407_s1 + $0x8c8] sm:$0xff]  ;;  %v5415_v59 = vld [vmem:[%s6300_s21 + $0x80] sm:$0xf]  ;;  %v6055_v61 = vld [vmem:[%s6300_s21 + $0x84] sm:$0xf] }
 0x10f   : > { %3528 = vmatpush.bf16.msra.mxu3 %v6090_v50  ;;  %v6056_v60 = vld [vmem:[%s6300_s21 + $0x124] sm:$0xf0] }
 0x110   : > { %3324 = vmatpush.bf16.msra.mxu0 %v6063_v62  ;;  %v1649_v9 = vpop.f32.mrf.mxu2  ;;  %v1464_v11 = vpop.f32.mrf.mxu0  ;;  %v5417_v62 = vld [vmem:[%s6300_s21 + $0x128] sm:$0xf0] }
 0x111   : > { %3342 = vmatpush.bf16.msra.mxu1 %v6071_v0  ;;  %v1667_v10 = vpop.f32.mrf.mxu3  ;;  %v1482_v4 = vpop.f32.mrf.mxu1  ;;  %v6100_v0 = vld [vmem:[%s7407_s1 + $0x938] sm:$0xff] }
 0x112   : > { %3511 = vmatpush.bf16.msra.mxu2 %v6081_v1  ;;  %v1668_v6 = vadd.f32 %v1667_v10, %v1649_v9  ;;  %v1483_v13 = vadd.f32 %v1482_v4, %v1464_v11  ;;  %v6108_v1 = vld [vmem:[%s7407_s1 + $0x978] sm:$0xff]  ;;  %v5420_v11 = vor.u32 %v6055_v61, %v5417_v62  ;;  %v6113_v61 = vld [vmem:[%s7407_s1 + $0x990] sm:$0xff] }
 0x113   : > { %3529 = vmatpush.bf16.msra.mxu3 %v6089_v2  ;;  %v5487_v2 = vld [vmem:[%s6300_s21 + $0x88] sm:$0xf]  ;;  %v6121_v62 = vld [vmem:[%s7407_s1 + $0x9d0] sm:$0xff] }
 0x114   : > { %3325 = vmatpush.bf16.msra.mxu0 %v6062_v5  ;;  %v7139_v17 = vadd.f32 %v1668_v6, %v1489_v3  ;;  %v1490_v20 = vadd.f32 %v1483_v13, %v7051_v24  ;;  %v6078_v24 = vld [vmem:[%s7407_s1 + $0x898] sm:$0xff]  ;;  %v5416_v6 = vor.u32 %v6056_v60, %v5415_v59  ;;  %v6103_v59 = vld [vmem:[%s7407_s1 + $0x950] sm:$0xff] }
 0x115   : > { %3343 = vmatpush.bf16.msra.mxu1 %v6070_v7  ;;  %v6118_v3 = vld [vmem:[%s7407_s1 + $0x9b8] sm:$0xff]  ;;  %v6074_v7 = vld [vmem:[%s6300_s21 + $0x12c] sm:$0xf0] }
 0x116   : > { %3512 = vmatpush.bf16.msra.mxu2 %v6080_v63  ;;  %v6126_v5 = vld [vmem:[%s7407_s1 + $0x9f8] sm:$0xff]  ;;  %v6073_v63 = vld [vmem:[%s6300_s21 + $0x8c] sm:$0xf]  ;;  %v5488_v13 = vor.u32 %v6074_v7, %v5487_v2 }
 0x117   : > { %3530 = vmatpush.bf16.msra.mxu3 %v6088_v8  ;;  %v5489_v8 = vld [vmem:[%s6300_s21 + $0x130] sm:$0xf0]  ;;  %v6102_v2 = vld [vmem:[%s7407_s1 + $0x948] sm:$0xff] }
 0x118   : > { %3326 = vmatpush.bf16.msra.mxu0 %v6061_v14  ;;  %v1651_v22 = vpop.f32.mrf.mxu2  ;;  %v1467_v34 = vpop.f32.mrf.mxu0  ;;  %v5492_v14 = vor.u32 %v6073_v63, %v5489_v8 }
 0x119   : > { %3344 = vmatpush.bf16.msra.mxu1 %v6069_v15  ;;  %v1669_v31 = vpop.f32.mrf.mxu3  ;;  %v1485_v35 = vpop.f32.mrf.mxu1 }
 0x11a   : > { %3513 = vmatpush.bf16.msra.mxu2 %v6079_v18  ;;  %v1670_v29 = vadd.f32 %v1669_v31, %v1651_v22  ;;  %v1486_v38 = vadd.f32 %v1485_v35, %v1467_v34  ;;  %v6107_v18 = vld [vmem:[%s7407_s1 + $0x970] sm:$0xff]  ;;  %v3364_v34 = vld [vmem:[%s6300_s21 + $0x1d8] sm:$0xff] }
 0x11b   : > { %3531 = vmatpush.bf16.msra.mxu3 %v6087_v19  ;;  %2962 = vmatmul.bf16.gmra.mxu0 %v2847_v32  ;;  %v6117_v19 = vld [vmem:[%s7407_s1 + $0x9b0] sm:$0xff] }
 0x11c   : > { %3327 = vmatpush.bf16.msra.mxu0 %v6060_v27  ;;  %v7166_v42 = vadd.f32 %v1670_v29, %v1490_v20  ;;  %v1491_v46 = vadd.f32 %v1486_v38, %v7084_v40  ;;  %2980 = vmatmul.bf16.gmra.mxu1 %v2848_v33  ;;  %v6076_v40 = vld [vmem:[%s7407_s1 + $0x888] sm:$0xff]  ;;  %v6125_v20 = vld [vmem:[%s7407_s1 + $0x9f0] sm:$0xff]  ;;  %v6097_v33 = vld [vmem:[%s7407_s1 + $0x920] sm:$0xff] }
 0x11d   : > { %3345 = vmatpush.bf16.msra.mxu1 %v6068_v28  ;;  %3149 = vmatmul.bf16.gmra.mxu2 %v3034_v36  ;;  %v3177_v31 = vld [vmem:[%s6300_s21 + $0x1d0] sm:$0xff]  ;;  %v6105_v29 = vld [vmem:[%s7407_s1 + $0x960] sm:$0xff] }
 0x11e   : > { %3514 = vmatpush.bf16.msra.mxu2 %v6078_v24  ;;  %3167 = vmatmul.bf16.gmra.mxu3 %v3035_v37  ;;  %v6115_v36 = vld [vmem:[%s7407_s1 + $0x9a0] sm:$0xff] }
 0x11f   : > { %3532 = vmatpush.bf16.msra.mxu3 %v6086_v30  ;;  %v6123_v37 = vld [vmem:[%s7407_s1 + $0x9e0] sm:$0xff] }
 0x120   : > { %3328 = vmatpush.bf16.msra.mxu0 %v6059_v39  ;;  %v1654_v50 = vpop.f32.mrf.mxu2  ;;  %v1469_v53 = vpop.f32.mrf.mxu0  ;;  %v3217_v39 = vunpack.c.l.b16 %v3177_v31 }
 0x121   : > { %3346 = vmatpush.bf16.msra.mxu1 %v6067_v41  ;;  %v1672_v51 = vpop.f32.mrf.mxu3  ;;  %v1487_v54 = vpop.f32.mrf.mxu1  ;;  %v3218_v41 = vunpack.c.h.b16 %v3177_v31 }
 0x122   : > { %3515 = vmatpush.bf16.msra.mxu2 %v6077_v43  ;;  %v1673_v45 = vadd.f32 %v1672_v51, %v1654_v50  ;;  %v3404_v43 = vunpack.c.l.b16 %v3364_v34  ;;  %v3221_v50 = vpack.c.b16 %v3217_v39, %v3217_v39 }
 0x123   : > { %3533 = vmatpush.bf16.msra.mxu3 %v6085_v44  ;;  %v3405_v44 = vunpack.c.h.b16 %v3364_v34  ;;  %v3222_v51 = vpack.c.b16 %v3218_v41, %v3218_v41 }
 0x124   : > { %3329 = vmatpush.bf16.msra.mxu0 %v6058_v47  ;;  %v7199_v58 = vadd.f32 %v1673_v45, %v1491_v46  ;;  %v6096_v46 = vld [vmem:[%s7407_s1 + $0x918] sm:$0xff] }
 0x125   : > { %3347 = vmatpush.bf16.msra.mxu1 %v6066_v48  ;;  %v6104_v47 = vld [vmem:[%s7407_s1 + $0x958] sm:$0xff] }
 0x126   : > { %3516 = vmatpush.bf16.msra.mxu2 %v6076_v40  ;;  %v6122_v48 = vld [vmem:[%s7407_s1 + $0x9d8] sm:$0xff] }
 0x127   : > { %3534 = vmatpush.bf16.msra.mxu3 %v6084_v49 }
 0x128   : > { %3330 = vmatpush.bf16.msra.mxu0 %v6057_v55  ;;  %v1656_v9 = vpop.f32.mrf.mxu2  ;;  %v1836_v4 = vpop.f32.mrf.mxu0  ;;  %v3408_v55 = vpack.c.b16 %v3404_v43, %v3404_v43 }
 0x129   : > { %3348 = vmatpush.bf16.msra.mxu1 %v6065_v52  ;;  %v1674_v10 = vpop.f32.mrf.mxu3  ;;  %v1854_v12 = vpop.f32.mrf.mxu1  ;;  %v3409_v52 = vpack.c.b16 %v3405_v44, %v3405_v44 }
 0x12a   : > { %3517 = vmatpush.bf16.msra.mxu2 %v6075_v56  ;;  %v1855_v15 = vadd.f32 %v1854_v12, %v1836_v4  ;;  %v6093_v10 = vld [vmem:[%s7407_s1 + $0x900] sm:$0xff] }
 0x12b   : > { %3535 = vmatpush.bf16.msra.mxu3 %v6083_v57  ;;  %3331 = vmatmul.bf16.vlgmr.msra.gmra.mxu0 %v5416_v6  ;;  %v6095_v57 = vld [vmem:[%s7407_s1 + $0x910] sm:$0xff]  ;;  %v6101_v6 = vld [vmem:[%s7407_s1 + $0x940] sm:$0xff] }
 0x12c   : > { %3697 = vmatpush.bf16.msrb.mxu0 %v6100_v0  ;;  %v1863_v21 = vadd.f32 %v1855_v15, %v7139_v17  ;;  %3349 = vmatmul.bf16.vlgmr.msra.gmra.mxu1 %v5420_v11  ;;  %v6116_v17 = vld [vmem:[%s7407_s1 + $0x9a8] sm:$0xff]  ;;  %v6111_v4 = vld [vmem:[%s7407_s1 + $0x980] sm:$0xff]  ;;  %v6134_v15 = vld [vmem:[%s7407_s1 + $0xa38] sm:$0xff] }
 0x12d   : > { %3715 = vmatpush.bf16.msrb.mxu1 %v6108_v1  ;;  %3518 = vmatmul.bf16.vlgmr.msra.gmra.mxu2 %v5488_v13  ;;  %v6094_v1 = vld [vmem:[%s7407_s1 + $0x908] sm:$0xff]  ;;  %v6119_v12 = vld [vmem:[%s7407_s1 + $0x9c0] sm:$0xff]  ;;  %v5559_v13 = vld [vmem:[%s6300_s21 + $0x90] sm:$0xf] }
 0x12e   : > { %3884 = vmatpush.bf16.msrb.mxu2 %v6118_v3  ;;  %3536 = vmatmul.bf16.vlgmr.msra.gmra.mxu3 %v5492_v14  ;;  %v6120_v3 = vld [vmem:[%s7407_s1 + $0x9c8] sm:$0xff]  ;;  %v6092_v14 = vld [vmem:[%s6300_s21 + $0x134] sm:$0xf0] }
 0x12f   : > { %3902 = vmatpush.bf16.msrb.mxu3 %v6126_v5 }
 0x130   : > { %3698 = vmatpush.bf16.msrb.mxu0 %v6099_v16  ;;  %v2023_v27 = vpop.f32.mrf.mxu2  ;;  %v1838_v30 = vpop.f32.mrf.mxu0  ;;  %v6142_v16 = vld [vmem:[%s7407_s1 + $0xa78] sm:$0xff] }
 0x131   : > { %3716 = vmatpush.bf16.msrb.mxu1 %v6107_v18  ;;  %v2041_v28 = vpop.f32.mrf.mxu3  ;;  %v1856_v22 = vpop.f32.mrf.mxu1  ;;  %v6091_v18 = vld [vmem:[%s6300_s21 + $0x94] sm:$0xf] }
 0x132   : > { %3885 = vmatpush.bf16.msrb.mxu2 %v6117_v19  ;;  %v2042_v24 = vadd.f32 %v2041_v28, %v2023_v27  ;;  %v1857_v32 = vadd.f32 %v1856_v22, %v1838_v30  ;;  %v5561_v19 = vld [vmem:[%s6300_s21 + $0x138] sm:$0xf0]  ;;  %v5560_v27 = vor.u32 %v6092_v14, %v5559_v13 }
 0x133   : > { %3903 = vmatpush.bf16.msrb.mxu3 %v6125_v20  ;;  %v5631_v20 = vld [vmem:[%s6300_s21 + $0x98] sm:$0xf]  ;;  %v5564_v28 = vor.u32 %v6091_v18, %v5561_v19 }
 0x134   : > { %3699 = vmatpush.bf16.msrb.mxu0 %v6098_v23  ;;  %v7254_v35 = vadd.f32 %v2042_v24, %v1863_v21  ;;  %v1864_v38 = vadd.f32 %v1857_v32, %v7166_v42  ;;  %v6114_v42 = vld [vmem:[%s7407_s1 + $0x998] sm:$0xff]  ;;  %v6110_v21 = vld [vmem:[%s6300_s21 + $0x13c] sm:$0xf0] }
 0x135   : > { %3717 = vmatpush.bf16.msrb.mxu1 %v6106_v25  ;;  %v6109_v23 = vld [vmem:[%s6300_s21 + $0x9c] sm:$0xf]  ;;  %v5633_v25 = vld [vmem:[%s6300_s21 + $0x140] sm:$0xf0]  ;;  %v5632_v22 = vor.u32 %v6110_v21, %v5631_v20 }
 0x136   : > { %3886 = vmatpush.bf16.msrb.mxu2 %v6116_v17  ;;  %v5636_v31 = vor.u32 %v6109_v23, %v5633_v25  ;;  %v6127_v21 = vld [vmem:[%s7407_s1 + $0xa00] sm:$0xff] }
 0x137   : > { %3904 = vmatpush.bf16.msrb.mxu3 %v6124_v26  ;;  %v6135_v23 = vld [vmem:[%s7407_s1 + $0xa40] sm:$0xff] }
 0x138   : > { %3700 = vmatpush.bf16.msrb.mxu0 %v6097_v33  ;;  %v2025_v40 = vpop.f32.mrf.mxu2  ;;  %v1841_v53 = vpop.f32.mrf.mxu0  ;;  %v6133_v33 = vld [vmem:[%s7407_s1 + $0xa30] sm:$0xff] }
 0x139   : > { %3718 = vmatpush.bf16.msrb.mxu1 %v6105_v29  ;;  %v2043_v49 = vpop.f32.mrf.mxu3  ;;  %v1859_v54 = vpop.f32.mrf.mxu1  ;;  %v6141_v29 = vld [vmem:[%s7407_s1 + $0xa70] sm:$0xff] }
 0x13a   : > { %3887 = vmatpush.bf16.msrb.mxu2 %v6115_v36  ;;  %v2044_v45 = vadd.f32 %v2043_v49, %v2025_v40  ;;  %v1860_v56 = vadd.f32 %v1859_v54, %v1841_v53  ;;  %v6132_v36 = vld [vmem:[%s7407_s1 + $0xa28] sm:$0xff] }
 0x13b   : > { %3905 = vmatpush.bf16.msrb.mxu3 %v6123_v37  ;;  %3336 = vmatmul.bf16.gmra.mxu0 %v3221_v50  ;;  %v6140_v37 = vld [vmem:[%s7407_s1 + $0xa68] sm:$0xff] }
 0x13c   : > { %3701 = vmatpush.bf16.msrb.mxu0 %v6096_v46  ;;  %v7281_v60 = vadd.f32 %v2044_v45, %v1864_v38  ;;  %v1865_v0 = vadd.f32 %v1860_v56, %v7199_v58  ;;  %3354 = vmatmul.bf16.gmra.mxu1 %v3222_v51  ;;  %v6112_v58 = vld [vmem:[%s7407_s1 + $0x988] sm:$0xff]  ;;  %v3926_v38 = vlaneseq  ;;  %v3551_v46 = vld [vmem:[%s6300_s21 + $0x1e0] sm:$0xff]  ;;  %v6138_v56 = vld [vmem:[%s7407_s1 + $0xa58] sm:$0xff] }
 0x13d   : > { %3719 = vmatpush.bf16.msrb.mxu1 %v6104_v47  ;;  %3523 = vmatmul.bf16.gmra.mxu2 %v3408_v55  ;;  %v3738_v40 = vld [vmem:[%s6300_s21 + $0x1e8] sm:$0xff]  ;;  %v3591_v45 = vunpack.c.l.b16 %v3551_v46  ;;  %v3592_v53 = vunpack.c.h.b16 %v3551_v46 }
 0x13e   : > { %3888 = vmatpush.bf16.msrb.mxu2 %v6114_v42  ;;  %3541 = vmatmul.bf16.gmra.mxu3 %v3409_v52  ;;  %v6131_v42 = vld [vmem:[%s7407_s1 + $0xa20] sm:$0xff]  ;;  %v3927_v50 = vand.u32 127, %v3926_v38  ;;  %v3778_v54 = vunpack.c.l.b16 %v3738_v40  ;;  %v3779_v55 = vunpack.c.h.b16 %v3738_v40  ;;  %v6130_v52 = vld [vmem:[%s7407_s1 + $0xa18] sm:$0xff] }
 0x13f   : > { %3906 = vmatpush.bf16.msrb.mxu3 %v6122_v48  ;;  %v6139_v48 = vld [vmem:[%s7407_s1 + $0xa60] sm:$0xff] }
 0x140   : > { %3702 = vmatpush.bf16.msrb.mxu0 %v6095_v57  ;;  %v2028_v5 = vpop.f32.mrf.mxu2  ;;  %v1843_v8 = vpop.f32.mrf.mxu0  ;;  %v3928_v57 = vadd.s32 128, %v3927_v50 }
 0x141   : > { %3720 = vmatpush.bf16.msrb.mxu1 %v6103_v59  ;;  %v2046_v7 = vpop.f32.mrf.mxu3  ;;  %v1861_v9 = vpop.f32.mrf.mxu1 }
 0x142   : > { %3889 = vmatpush.bf16.msrb.mxu2 %v6113_v61  ;;  %v2047_v63 = vadd.f32 %v2046_v7, %v2028_v5  ;;  %v6129_v7 = vld [vmem:[%s7407_s1 + $0xa10] sm:$0xff]  ;;  %vm3930_vm0 = vcmp.lt.s32.totalorder %v3928_v57, 172 }
 0x143   : > { %3907 = vmatpush.bf16.msrb.mxu3 %v6121_v62  ;;  %v3596_v62 = vpack.c.b16 %v3592_v53, %v3592_v53  ;;  %vm3931_vm2 = vmpackc.low %vm3930_vm0, %vm6183_vm1 }
 0x144   : > { %3703 = vmatpush.bf16.msrb.mxu0 %v6094_v1  ;;  %v7308_v11 = vadd.f32 %v2047_v63, %v1865_v0  ;;  %v6137_v63 = vld [vmem:[%s7407_s1 + $0xa50] sm:$0xff] }
 0x145   : > { %3721 = vmatpush.bf16.msrb.mxu1 %v6102_v2 }
 0x146   : > { %3890 = vmatpush.bf16.msrb.mxu2 %v6112_v58  ;;  %v3782_v58 = vpack.c.b16 %v3778_v54, %v3778_v54 }
 0x147   : > { %3908 = vmatpush.bf16.msrb.mxu3 %v6120_v3  ;;  %v3783_v3 = vpack.c.b16 %v3779_v55, %v3779_v55 }
 0x148   : > { %3704 = vmatpush.bf16.msrb.mxu0 %v6093_v10  ;;  %v2030_v17 = vpop.f32.mrf.mxu2  ;;  %v2210_v24 = vpop.f32.mrf.mxu0  ;;  %v6128_v10 = vld [vmem:[%s7407_s1 + $0xa08] sm:$0xff] }
 0x149   : > { %3722 = vmatpush.bf16.msrb.mxu1 %v6101_v6  ;;  %v2048_v26 = vpop.f32.mrf.mxu3  ;;  %v2228_v30 = vpop.f32.mrf.mxu1  ;;  %v6136_v6 = vld [vmem:[%s7407_s1 + $0xa48] sm:$0xff] }
 0x14a   : > { %3891 = vmatpush.bf16.msrb.mxu2 %v6111_v4  ;;  %v2229_v32 = vadd.f32 %v2228_v30, %v2210_v24  ;;  %v3923_v4 = vld [vmem:[%s6300_s21 + $0xa0] sm:$0xff] }
 0x14b   : > { %3909 = vmatpush.bf16.msrb.mxu3 %v6119_v12  ;;  %3705 = vmatmul.bf16.vlgmr.msrb.gmra.mxu0 %v5560_v27  ;;  %v3924_v12 = vld [vmem:[%s6300_s21 + $0x148] sm:$0xff]  ;;  %v3932_v19 = vsel %vm3931_vm2, %v3923_v4, 0 }
 0x14c   : > { %4080 = vmatpush.bf16.msra.mxu0 %v6134_v15  ;;  %v2237_v34 = vadd.f32 %v2229_v32, %v7254_v35  ;;  %3723 = vmatmul.bf16.vlgmr.msrb.gmra.mxu1 %v5564_v28  ;;  %v3933_v20 = vsel %vm3931_vm2, %v3924_v12, 0  ;;  %v3970_v26 = vunpack.c.l.b16 %v3932_v19  ;;  %v3971_v28 = vunpack.c.h.b16 %v3932_v19 }
 0x14d   : > { %4098 = vmatpush.bf16.msra.mxu1 %v6142_v16  ;;  %3892 = vmatmul.bf16.vlgmr.msrb.gmra.mxu2 %v5632_v22  ;;  %v3972_v27 = vunpack.c.l.b16 %v3933_v20  ;;  %v3973_v24 = vunpack.c.h.b16 %v3933_v20 }
 0x14e   : > { %6148 = vmatpush.bf16.msra.mxu2 %v6134_v15  ;;  %3910 = vmatmul.bf16.vlgmr.msrb.gmra.mxu3 %v5636_v31 }
 0x14f   : > { %6156 = vmatpush.bf16.msra.mxu3 %v6142_v16 }
 0x150   : > { %4081 = vmatpush.bf16.msra.mxu0 %v6133_v33  ;;  %v2397_v35 = vpop.f32.mrf.mxu2  ;;  %v2212_v43 = vpop.f32.mrf.mxu0 }
 0x151   : > { %4099 = vmatpush.bf16.msra.mxu1 %v6141_v29  ;;  %v2415_v39 = vpop.f32.mrf.mxu3  ;;  %v2230_v44 = vpop.f32.mrf.mxu1 }
 0x152   : > { %6149 = vmatpush.bf16.msra.mxu2 %v6133_v33  ;;  %v2416_v41 = vadd.f32 %v2415_v39, %v2397_v35  ;;  %v2231_v47 = vadd.f32 %v2230_v44, %v2212_v43  ;;  %v3976_v33 = vpack.c.b16 %v3972_v27, %v3970_v26 }
 0x153   : > { %6157 = vmatpush.bf16.msra.mxu3 %v6141_v29  ;;  %v3977_v29 = vpack.c.b16 %v3973_v24, %v3971_v28 }
 0x154   : > { %4082 = vmatpush.bf16.msra.mxu0 %v6132_v36  ;;  %v7351_v49 = vadd.f32 %v2416_v41, %v2237_v34  ;;  %v2238_v51 = vadd.f32 %v2231_v47, %v7281_v60  ;;  %v3595_v60 = vpack.c.b16 %v3591_v45, %v3591_v45 }
 0x155   : > { %4100 = vmatpush.bf16.msra.mxu1 %v6140_v37 }
 0x156   : > { %6150 = vmatpush.bf16.msra.mxu2 %v6132_v36 }
 0x157   : > { %6158 = vmatpush.bf16.msra.mxu3 %v6140_v37 }
 0x158   : > { %4083 = vmatpush.bf16.msra.mxu0 %v6131_v42  ;;  %v2399_v59 = vpop.f32.mrf.mxu2  ;;  %v2215_v1 = vpop.f32.mrf.mxu0 }
 0x159   : > { %4101 = vmatpush.bf16.msra.mxu1 %v6139_v48  ;;  %v2417_v61 = vpop.f32.mrf.mxu3  ;;  %v2233_v2 = vpop.f32.mrf.mxu1 }
 0x15a   : > { %6151 = vmatpush.bf16.msra.mxu2 %v6131_v42  ;;  %v2418_v0 = vadd.f32 %v2417_v61, %v2399_v59  ;;  %v2234_v5 = vadd.f32 %v2233_v2, %v2215_v1 }
 0x15b   : > { %6159 = vmatpush.bf16.msra.mxu3 %v6139_v48  ;;  %3710 = vmatmul.bf16.gmra.mxu0 %v3595_v60 }
 0x15c   : > { %4084 = vmatpush.bf16.msra.mxu0 %v6130_v52  ;;  %v7367_v8 = vadd.f32 %v2418_v0, %v2238_v51  ;;  %v2239_v9 = vadd.f32 %v2234_v5, %v7308_v11  ;;  %3728 = vmatmul.bf16.gmra.mxu1 %v3596_v62  ;;  %v3925_v11 = vld [vmem:[%s6300_s21 + $0x1f0] sm:$0xff]  ;;  %s185_s21 = scalar_select %p184_p4, %s6211_s13, 1 }
 0x15d   : > { %4102 = vmatpush.bf16.msra.mxu1 %v6138_v56  ;;  %3897 = vmatmul.bf16.gmra.mxu2 %v3782_v58  ;;  %v3934_v25 = vsel %vm3931_vm2, %v3925_v11, 0  ;;  %s4259_s13 = sshll.u32 %s7411_s7, 2 }
 0x15e   : > { %6152 = vmatpush.bf16.msra.mxu2 %v6130_v52  ;;  %3915 = vmatmul.bf16.gmra.mxu3 %v3783_v3  ;;  %v3974_v30 = vunpack.c.l.b16 %v3934_v25  ;;  %v3975_v22 = vunpack.c.h.b16 %v3934_v25  ;;  %s4260_s20 = sshll.u32 %s185_s21, 3  ;;  %s182_s29 = scalar_lea.vmem %s7408_s2, %s4259_s13 }
 0x15f   : > { %6160 = vmatpush.bf16.msra.mxu3 %v6138_v56  ;;  %s7392_s24 = scalar_lea.vmem %s7409_s3, %s4260_s20 }
 0x160   : > { %4085 = vmatpush.bf16.msra.mxu0 %v6129_v7  ;;  %v2402_v13 = vpop.f32.mrf.mxu2  ;;  %v2217_v16 = vpop.f32.mrf.mxu0  ;;  %v3978_v37 = vpack.c.b16 %v3974_v30, %v3974_v30  ;;  %v3979_v35 = vpack.c.b16 %v3975_v22, %v3975_v22 }
 0x161   : > { %4103 = vmatpush.bf16.msra.mxu1 %v6137_v63  ;;  %v2420_v14 = vpop.f32.mrf.mxu3  ;;  %v2235_v18 = vpop.f32.mrf.mxu1 }
 0x162   : > { %6153 = vmatpush.bf16.msra.mxu2 %v6129_v7  ;;  %v2421_v15 = vadd.f32 %v2420_v14, %v2402_v13 }
 0x163   : > { %6161 = vmatpush.bf16.msra.mxu3 %v6137_v63 }
 0x164   : > { %4086 = vmatpush.bf16.msra.mxu0 %v6128_v10  ;;  %v2426_v17 = vadd.f32 %v2421_v15, %v2239_v9 }
 0x165   : > { %4104 = vmatpush.bf16.msra.mxu1 %v6136_v6 }
 0x166   : > { %6154 = vmatpush.bf16.msra.mxu2 %v6128_v10 }
 0x167   : > { %6162 = vmatpush.bf16.msra.mxu3 %v6136_v6 }
 0x168   : > { %4087 = vmatpush.bf16.msra.mxu0 %v6127_v21  ;;  %v2404_v31 = vpop.f32.mrf.mxu2  ;;  %v2584_v34 = vpop.f32.mrf.mxu0 }
 0x169   : > { %4105 = vmatpush.bf16.msra.mxu1 %v6135_v23  ;;  %v2422_v32 = vpop.f32.mrf.mxu3  ;;  %v2602_v36 = vpop.f32.mrf.mxu1 }
 0x16a   : > { %6155 = vmatpush.bf16.msra.mxu2 %v6127_v21  ;;  %v2603_v39 = vadd.f32 %v2602_v36, %v2584_v34 }
 0x16b   : > { %6163 = vmatpush.bf16.msra.mxu3 %v6135_v23  ;;  %4088 = vmatmul.bf16.vlgmr.msra.gmra.mxu0 %v3976_v33 }
 0x16c   : > { %v2611_v41 = vadd.f32 %v2603_v39, %v7351_v49  ;;  %4106 = vmatmul.bf16.vlgmr.msra.gmra.mxu1 %v3977_v29 }
 0x16d   : > { %4093 = vmatmul.bf16.vlgmr.msra.gmra.mxu2 %v3978_v37 }
 0x16e   : > { %4111 = vmatmul.bf16.vlgmr.msra.gmra.mxu3 %v3979_v35 }
 0x170   : > { %v2771_v43 = vpop.f32.mrf.mxu2  ;;  %v2586_v47 = vpop.f32.mrf.mxu0 }
 0x171   : > { %v2789_v44 = vpop.f32.mrf.mxu3  ;;  %v2604_v42 = vpop.f32.mrf.mxu1 }
 0x172   : > { %v2790_v46 = vadd.f32 %v2789_v44, %v2771_v43  ;;  %v2605_v48 = vadd.f32 %v2604_v42, %v2586_v47 }
 0x174   : > { %v2798_v40 = vadd.f32 %v2790_v46, %v2611_v41  ;;  %v2612_v50 = vadd.f32 %v2605_v48, %v7367_v8 }
 0x178   : > { %v2773_v51 = vpop.f32.mrf.mxu2  ;;  %v2589_v54 = vpop.f32.mrf.mxu0 }
 0x179   : > { %v2791_v45 = vpop.f32.mrf.mxu3  ;;  %v2607_v55 = vpop.f32.mrf.mxu1 }
 0x17a   : > { %v2792_v53 = vadd.f32 %v2791_v45, %v2773_v51  ;;  %v2608_v52 = vadd.f32 %v2607_v55, %v2589_v54 }
 0x17c   : > { %v2799_v49 = vadd.f32 %v2792_v53, %v2612_v50  ;;  %v2613_v56 = vadd.f32 %v2608_v52, %v2426_v17 }
 0x180   : > { %v2776_v57 = vpop.f32.mrf.mxu2  ;;  %v2591_v60 = vpop.f32.mrf.mxu0 }
 0x181   : > { %v2794_v59 = vpop.f32.mrf.mxu3  ;;  %v2609_v62 = vpop.f32.mrf.mxu1 }
 0x182   : > { %v2795_v61 = vadd.f32 %v2794_v59, %v2776_v57  ;;  %v6184_v59 = vmov 0.0  }
 0x183   : > { %4144 = vst [vmem:[%s7392_s24] sm:$0xff] %v6184_v59 }
 0x184   : > { %v2800_v0 = vadd.f32 %v2795_v61, %v2613_v56 }
 0x188   : > { %v2778_v1 = vpop.f32.mrf.mxu2  ;;  %v2958_v58 = vpop.f32.mrf.mxu0 }
 0x189   : > { %v2796_v2 = vpop.f32.mrf.mxu3  ;;  %v2976_v3 = vpop.f32.mrf.mxu1 }
 0x18a   : > { %v2977_v5 = vadd.f32 %v2976_v3, %v2958_v58 }
 0x18c   : > { %v2985_v7 = vadd.f32 %v2977_v5, %v2798_v40 }
 0x190   : > { %v3145_v63 = vpop.f32.mrf.mxu2  ;;  %v2960_v10 = vpop.f32.mrf.mxu0 }
 0x191   : > { %v3163_v8 = vpop.f32.mrf.mxu3  ;;  %v2978_v6 = vpop.f32.mrf.mxu1 }
 0x192   : > { %v3164_v9 = vadd.f32 %v3163_v8, %v3145_v63  ;;  %v2979_v4 = vadd.f32 %v2978_v6, %v2960_v10 }
 0x194   : > { %v3172_v12 = vadd.f32 %v3164_v9, %v2985_v7  ;;  %v2986_v11 = vadd.f32 %v2979_v4, %v2799_v49 }
 0x198   : > { %v3147_v13 = vpop.f32.mrf.mxu2  ;;  %v2963_v16 = vpop.f32.mrf.mxu0 }
 0x199   : > { %v3165_v14 = vpop.f32.mrf.mxu3  ;;  %v2981_v18 = vpop.f32.mrf.mxu1 }
 0x19a   : > { %v3166_v15 = vadd.f32 %v3165_v14, %v3147_v13  ;;  %v2982_v19 = vadd.f32 %v2981_v18, %v2963_v16  ;;  %v4120_v18 = vshrl.u32 %v3926_v38, 7 }
 0x19c   : > { %v3173_v20 = vadd.f32 %v3166_v15, %v2986_v11  ;;  %v2987_v21 = vadd.f32 %v2982_v19, %v2800_v0 }
 0x1a0   : > { %v3150_v23 = vpop.f32.mrf.mxu2  ;;  %v2965_v26 = vpop.f32.mrf.mxu0 }
 0x1a1   : > { %v3168_v25 = vpop.f32.mrf.mxu3  ;;  %v2983_v27 = vpop.f32.mrf.mxu1  ;;  %v4125_v26 = vstv %s4124_s26 }
 0x1a2   : > { %v3169_v17 = vadd.f32 %v3168_v25, %v3150_v23  ;;  %v4122_v27 = vadd.s32 16, %v4120_v18  ;;  %vm4126_vm3 = vcmp.lt.s32.totalorder %v4120_v18, %v4125_v26 }
 0x1a4   : > { %v3174_v28 = vadd.f32 %v3169_v17, %v2987_v21  ;;  %vm4128_vm4 = vcmp.lt.s32.totalorder %v4122_v27, %v4125_v26 }
 0x1a8   : > { %v3152_v24 = vpop.f32.mrf.mxu2  ;;  %v3332_v22 = vpop.f32.mrf.mxu0 }
 0x1a9   : > { %v3170_v30 = vpop.f32.mrf.mxu3  ;;  %v3350_v31 = vpop.f32.mrf.mxu1 }
 0x1aa   : > { %v3351_v32 = vadd.f32 %v3350_v31, %v3332_v22  ;;  %v4121_v30 = vadd.s32 8, %v4120_v18 }
 0x1ac   : > { %v3359_v33 = vadd.f32 %v3351_v32, %v3172_v12  ;;  %vm4127_vm5 = vcmp.lt.s32.totalorder %v4121_v30, %v4125_v26 }
 0x1b0   : > { %v3519_v29 = vpop.f32.mrf.mxu2  ;;  %v3334_v36 = vpop.f32.mrf.mxu0 }
 0x1b1   : > { %v3537_v34 = vpop.f32.mrf.mxu3  ;;  %v3352_v37 = vpop.f32.mrf.mxu1 }
 0x1b2   : > { %v3538_v1 = vadd.f32 %v3537_v34, %v3519_v29  ;;  %v3353_v2 = vadd.f32 %v3352_v37, %v3334_v36 }
 0x1b4   : > { %v3546_v6 = vadd.f32 %v3538_v1, %v3359_v33  ;;  %v3360_v12 = vadd.f32 %v3353_v2, %v3173_v20 }
 0x1b8   : > { %v3521_v35 = vpop.f32.mrf.mxu2  ;;  %v3337_v41 = vpop.f32.mrf.mxu0 }
 0x1b9   : > { %v3539_v39 = vpop.f32.mrf.mxu3  ;;  %v3355_v43 = vpop.f32.mrf.mxu1 }
 0x1ba   : > { %v3356_v58 = vadd.f32 %v3355_v43, %v3337_v41  ;;  %v3540_v63 = vadd.f32 %v3539_v39, %v3521_v35 }
 0x1bc   : > { %v3361_v11 = vadd.f32 %v3356_v58, %v3174_v28  ;;  %v3547_v19 = vadd.f32 %v3540_v63, %v3360_v12 }
 0x1c0   : > { %v3524_v44 = vpop.f32.mrf.mxu2  ;;  %v3339_v47 = vpop.f32.mrf.mxu0 }
 0x1c1   : > { %v3542_v46 = vpop.f32.mrf.mxu3  ;;  %v3357_v42 = vpop.f32.mrf.mxu1 }
 0x1c2   : > { %v3543_v8 = vadd.f32 %v3542_v46, %v3524_v44 }
 0x1c4   : > { %v3548_v21 = vadd.f32 %v3543_v8, %v3361_v11 }
 0x1c8   : > { %v3526_v48 = vpop.f32.mrf.mxu2  ;;  %v3706_v50 = vpop.f32.mrf.mxu0 }
 0x1c9   : > { %v3544_v40 = vpop.f32.mrf.mxu3  ;;  %v3724_v51 = vpop.f32.mrf.mxu1 }
 0x1ca   : > { %v3725_v3 = vadd.f32 %v3724_v51, %v3706_v50 }
 0x1cc   : > { %v3733_v14 = vadd.f32 %v3725_v3, %v3546_v6 }
 0x1d0   : > { %v3893_v45 = vpop.f32.mrf.mxu2  ;;  %v3708_v54 = vpop.f32.mrf.mxu0 }
 0x1d1   : > { %v3911_v53 = vpop.f32.mrf.mxu3  ;;  %v3726_v55 = vpop.f32.mrf.mxu1 }
 0x1d2   : > { %v3912_v4 = vadd.f32 %v3911_v53, %v3893_v45  ;;  %v3727_v15 = vadd.f32 %v3726_v55, %v3708_v54 }
 0x1d4   : > { %v3920_v25 = vadd.f32 %v3912_v4, %v3733_v14  ;;  %v3734_v22 = vadd.f32 %v3727_v15, %v3547_v19 }
 0x1d8   : > { %v3895_v52 = vpop.f32.mrf.mxu2  ;;  %v3711_v56 = vpop.f32.mrf.mxu0 }
 0x1d9   : > { %v3913_v49 = vpop.f32.mrf.mxu3  ;;  %v3729_v57 = vpop.f32.mrf.mxu1 }
 0x1da   : > { %v3730_v13 = vadd.f32 %v3729_v57, %v3711_v56  ;;  %v3914_v17 = vadd.f32 %v3913_v49, %v3895_v52 }
 0x1dc   : > { %v3735_v24 = vadd.f32 %v3730_v13, %v3548_v21  ;;  %v3921_v38 = vadd.f32 %v3914_v17, %v3734_v22 }
 0x1e0   : > { %v3898_v61 = vpop.f32.mrf.mxu2  ;;  %v3713_v62 = vpop.f32.mrf.mxu0 }
 0x1e1   : > { %v3916_v60 = vpop.f32.mrf.mxu3  ;;  %v3731_v0 = vpop.f32.mrf.mxu1 }
 0x1e2   : > { %v3917_v23 = vadd.f32 %v3916_v60, %v3898_v61 }
 0x1e4   : > { %v3922_v32 = vadd.f32 %v3917_v23, %v3735_v24 }
 0x1e8   : > { %v3900_v5 = vpop.f32.mrf.mxu2  ;;  %v4089_v9 = vpop.f32.mrf.mxu0 }
 0x1e9   : > { %v3918_v7 = vpop.f32.mrf.mxu3  ;;  %v4107_v10 = vpop.f32.mrf.mxu1 }
 0x1ea   : > { %v4108_v16 = vadd.f32 %v4107_v10, %v4089_v9 }
 0x1ec   : > { %v4116_v20 = vadd.f32 %v4108_v16, %v3920_v25 }
 0x1ee   : > { %v4135_v35 = vsel %vm4126_vm3, %v4116_v20, 0.0 }
 0x1ef   : > { %v4154_v46 = vmul.f32 %v4135_v35, %v4135_v35 }
 0x1f0   : > { %v4094_v28 = vpop.f32.mrf.mxu2  ;;  %v4091_v29 = vpop.f32.mrf.mxu0 }
 0x1f1   : > { %v4112_v31 = vpop.f32.mrf.mxu3  ;;  %v4109_v34 = vpop.f32.mrf.mxu1 }
 0x1f2   : > { %v4113_v33 = vadd.f32 %v4112_v31, %v4094_v28  ;;  %v4110_v36 = vadd.f32 %v4109_v34, %v4091_v29 }
 0x1f4   : > { %v4118_v37 = vadd.f32 %v4113_v33, %v3922_v32  ;;  %v4117_v39 = vadd.f32 %v4110_v36, %v3921_v38 }
 0x1f6   : > { %v4137_v41 = vsel %vm4128_vm4, %v4118_v37, 0.0  ;;  %v4136_v44 = vsel %vm4127_vm5, %v4117_v39, 0.0 }
 0x1f7   : > { %v4140_v43 = vpack.c.bf16 %v4137_v41, %v4137_v41  ;;  %v6146_v47 = vpack.c.bf16 %v4136_v44, %v4135_v35  ;;  %v4145_v42 = vadd.f32 %v4136_v44, %v4135_v35  ;;  %v4155_v48 = vmul.f32 %v4136_v44, %v4136_v44 }
 0x1f8   : > { %v4096_v40 = vpop.f32.mrf.mxu2  ;;  %v4156_v51 = vmul.f32 %v4137_v41, %v4137_v41 }
 0x1f9   : > { %4143 = vst [vmem:[%s182_s29 + $0x8] sm:$0xf] %v4140_v43  ;;  %v4114_v50 = vpop.f32.mrf.mxu3  ;;  %v4146_v45 = vadd.f32 %v4145_v42, %v4137_v41  ;;  %v4157_v53 = vadd.f32 %v4155_v48, %v4154_v46 }
 0x1fa   : > { %6147 = vst [vmem:[%s182_s29] sm:$0xff] %v6146_v47  }
 0x1fb   : > { %v4147_v54 = vrot.slane %v4146_v45, 4  ;;  %v4158_v55 = vadd.f32 %v4157_v53, %v4156_v51 }
 0x1fd   : > { %v4148_v52 = vadd.f32 %v4147_v54, %v4146_v45  ;;  %v4159_v49 = vrot.slane %v4158_v55, 4 }
 0x1ff   : > { %v4149_v56 = vrot.slane %v4148_v52, 2  ;;  %v4160_v57 = vadd.f32 %v4159_v49, %v4158_v55 }
 0x201   : > { %v4150_v59 = vadd.f32 %v4149_v56, %v4148_v52  ;;  %v4161_v61 = vrot.slane %v4160_v57, 2 }
 0x203   : > { %v4151_v60 = vrot.slane %v4150_v59, 1  ;;  %v4162_v62 = vadd.f32 %v4161_v61, %v4160_v57 }
 0x205   : > { %v4152_v0 = vadd.f32 %v4151_v60, %v4150_v59  ;;  %v4163_v1 = vrot.slane %v4162_v62, 1 }
 0x207   : > { %4153 = vst [vmem:[%s7392_s24] sm:$0x1] %v4152_v0  ;;  %v4164_v2 = vadd.f32 %v4163_v1, %v4162_v62 }
 0x209   : > { %4165 = vst [vmem:[%s7392_s24 + $0x1] sm:$0x1] %v4164_v2 }
 0x20a PF: > { %s14_s12 = sadd.s32 1, %s6181_s12  }
 0x20b   : > { %p11_p5 = scmp.ge.s32.totalorder %s14_s12, 4  }
 0x20d   :  { %13 = sbr.rel (!%p11_p5) target bundleno = 1 (0x1), region = 70 }

</bundles_post_ra>
